<compile_context>
chip_gen: v7x
topology: tpu7x:2x2x1
jax: 0.10.0
libtpu: 0.0.40
codegen_flags: <defaults>
</compile_context>

<pallas_src>
import functools
import math

import jax
import jax.numpy as jnp
from jax import lax
from jax.experimental import pallas as pl
from jax.experimental.pallas import tpu as pltpu


# ----------------------------------- shared math helpers ----------------------------------------

def _layernorm(x, gamma, beta, eps=1e-6):
    # Biased variance, eps=1e-6 (matches the assignment's custom LayerNormalization).
    mu = jnp.mean(x, axis=-1, keepdims=True)
    var = jnp.mean((x - mu) ** 2, axis=-1, keepdims=True)
    return gamma * (x - mu) * lax.rsqrt(var + eps) + beta


def _pack_heads(t2d, n_batch, seq, n_heads, dh):
    """[B*seq, H*dh] -> [B*H*seq, dh], rows grouped by (batch, head)."""
    return jnp.concatenate(
        [t2d[b * seq:(b + 1) * seq, h * dh:(h + 1) * dh]
         for b in range(n_batch) for h in range(n_heads)], axis=0)


def _unpack_heads(tp, n_batch, seq, n_heads, dh):
    """[B*H*seq, dh] -> [B*seq, H*dh] (inverse of _pack_heads)."""
    rows = []
    for b in range(n_batch):
        heads = [tp[(b * n_heads + h) * seq:(b * n_heads + h + 1) * seq, :]
                 for h in range(n_heads)]
        rows.append(jnp.concatenate(heads, axis=1))
    return jnp.concatenate(rows, axis=0)


def _attention_packed(q2d, k2d, v2d, bias, n_batch, sq, sk, n_heads,
                      *, mm_dtype, approx_recip):
    """Packed-heads attention: 2 matmuls + 1 softmax for all batches & heads.

    q2d [B*sq, D] (already scaled by 1/sqrt(dh)); k2d/v2d [B*sk, D].
    bias is an additive [B*H*sq, B*H*sk] matrix: 0 to keep, -1e9 on cross-(batch,head)
    blocks and masked positions.  Returns [B*sq, D].
    """
    dh = q2d.shape[-1] // n_heads
    qp = _pack_heads(q2d, n_batch, sq, n_heads, dh)     # [BH*sq, dh]
    kp = _pack_heads(k2d, n_batch, sk, n_heads, dh)     # [BH*sk, dh]
    vp = _pack_heads(v2d, n_batch, sk, n_heads, dh)     # [BH*sk, dh]

    s = jnp.dot(qp.astype(mm_dtype), kp.T.astype(mm_dtype),
                preferred_element_type=jnp.float32)      # [BH*sq, BH*sk]
    s = s + bias
    s = s - jnp.max(s, axis=-1, keepdims=True)
    p = jnp.exp(s)
    denom = jnp.sum(p, axis=-1, keepdims=True)
    if approx_recip:
        p = p * pl.reciprocal(denom, approx=True)        # EUP slot
    else:
        p = p / denom
    ctx = jnp.dot(p.astype(mm_dtype), vp.astype(mm_dtype),
                  preferred_element_type=jnp.float32)    # [BH*sq, dh]
    return _unpack_heads(ctx, n_batch, sq, n_heads, dh)  # [B*sq, D]


# ----------------------------------------- Pallas kernel ----------------------------------------

def _decoder_layer_kernel(acts_ref, bias_ref, wd_ref, w2_ref, vec_ref, out_ref,
                          *, n_batch, s_tgt, s_mem, d_model, d_ff, n_heads,
                          approx_recip):
    D, DFF, H = d_model, d_ff, n_heads
    BS = n_batch * s_tgt
    BHS = n_batch * H * s_tgt
    mm_dtype = wd_ref.dtype

    acts = acts_ref[...].astype(jnp.float32)             # [B*S + B*Sm, D]
    x = acts[:BS, :]                                      # [B*S, D]
    mem = acts[BS:, :]                                    # [B*Sm, D]

    wd = wd_ref[...]                                      # [D, 8D+DFF]   (mm_dtype)
    w2 = w2_ref[...]                                      # [DFF, D]      (mm_dtype)
    vec = vec_ref[...]                                    # [16, max(D,DFF)] f32
    bias = bias_ref[...]                                  # [BHS, BH*(S+Sm)] f32
    bias_self = bias[:, :BHS]
    bias_cross = bias[:, BHS:]

    def mm(a, w):  # MXU matmul, f32 accumulation
        return jnp.dot(a.astype(mm_dtype), w, preferred_element_type=jnp.float32)

    def vrow(i, width):  # static row slice from the packed vector slab
        return vec[i:i + 1, :width]

    # Weight-slab column layout (see prepare_decoder_params):
    # [ wq1 | wk1 | wv1 | wo1 | wq2 | wk2 | wv2 | wo2 | w1 ]
    wqkv1 = wd[:, 0:3 * D]
    wo1 = wd[:, 3 * D:4 * D]
    wq2 = wd[:, 4 * D:5 * D]
    wkv2 = wd[:, 5 * D:7 * D]
    wo2 = wd[:, 7 * D:8 * D]
    w1 = wd[:, 8 * D:8 * D + DFF]

    attend = functools.partial(_attention_packed, n_batch=n_batch, n_heads=H,
                               mm_dtype=mm_dtype, approx_recip=approx_recip)

    # ---- sublayer 1: masked self-attention (fused QKV), LayerNorm (dropout=id), residual ----
    qkv = mm(x, wqkv1)                                    # [B*S, 3D]
    q1 = qkv[:, 0:D] + vrow(0, D)
    k1 = qkv[:, D:2 * D] + vrow(1, D)
    v1 = qkv[:, 2 * D:3 * D] + vrow(2, D)
    sa = attend(q1, k1, v1, bias_self, sq=s_tgt, sk=s_tgt)
    sa = mm(sa, wo1) + vrow(3, D)
    x = x + _layernorm(sa, vrow(10, D), vrow(11, D))

    # ---- sublayer 2: cross-attention over memory (fused KV), LayerNorm, residual ----
    q2 = mm(x, wq2) + vrow(4, D)
    kv = mm(mem, wkv2)                                    # [B*Sm, 2D]
    k2 = kv[:, 0:D] + vrow(5, D)
    v2 = kv[:, D:2 * D] + vrow(6, D)
    ca = attend(q2, k2, v2, bias_cross, sq=s_tgt, sk=s_mem)
    ca = mm(ca, wo2) + vrow(7, D)
    x = x + _layernorm(ca, vrow(12, D), vrow(13, D))

    # ---- sublayer 3: position-wise FFN (Linear -> ReLU -> Linear), LayerNorm, residual ----
    h = jnp.maximum(mm(x, w1) + vrow(8, DFF), 0.0)
    ff = mm(h, w2) + vrow(9, D)
    x = x + _layernorm(ff, vrow(14, D), vrow(15, D))

    # TODO(synk): at production sizes (S*D multiple of 128) present the output as a
    #             lane-dense [B*S, D>=128] slab so this final store is an unmasked vst.
    out_ref[...] = x.astype(out_ref.dtype)


# --------------------------------- one-time parameter packing -----------------------------------

def prepare_decoder_params(params, n_heads, *, matmul_dtype=jnp.float32):
    """One-time packing of all weights/biases into 3 slabs (hoisted out of the forward
    wrapper).  1/sqrt(dh) is folded into Wq/bq; QKV / KV blocks are contiguous so the
    kernel can do fused projections with single matmuls."""
    p = params
    D = p["wq1"].shape[0]
    DFF = p["w1"].shape[1]
    scale = 1.0 / math.sqrt(D // n_heads)

    wd = jnp.concatenate(
        [p["wq1"] * scale, p["wk1"], p["wv1"], p["wo1"],
         p["wq2"] * scale, p["wk2"], p["wv2"], p["wo2"], p["w1"]],
        axis=1).astype(matmul_dtype)                      # [D, 8D + DFF]
    w2 = p["w2"].astype(matmul_dtype)                     # [DFF, D]

    vw = max(D, DFF)

    def row(v):
        v = jnp.asarray(v, jnp.float32).reshape(1, -1)
        return jnp.pad(v, ((0, 0), (0, vw - v.shape[-1])))

    vec = jnp.concatenate(
        [row(p["bq1"] * scale), row(p["bk1"]), row(p["bv1"]), row(p["bo1"]),
         row(p["bq2"] * scale), row(p["bk2"]), row(p["bv2"]), row(p["bo2"]),
         row(p["b1"]), row(p["b2"]),
         row(p["g1"]), row(p["be1"]), row(p["g2"]), row(p["be2"]),
         row(p["g3"]), row(p["be3"])], axis=0)            # [16, max(D, DFF)] f32
    return {"wd": wd, "w2": w2, "vec": vec, "d_model": D, "d_ff": DFF}


def prepare_attention_bias(tgt_mask, n_batch, s_tgt, s_mem, n_heads, src_mask=None):
    """Additive bias for the packed-heads score matrices, built once in the wrapper.
    Columns = [self-attention | cross-attention]; entries outside the own (batch, head)
    block or masked by tgt_mask/src_mask get -1e9 so they vanish in the softmax."""
    H = n_heads

    def block_bias(sq, sk, mask):
        rq = jnp.arange(n_batch * H * sq)
        rk = jnp.arange(n_batch * H * sk)
        bq, hq, qi = rq // (H * sq), (rq // sq) % H, rq % sq
        bk, hk, ki = rk // (H * sk), (rk // sk) % H, rk % sk
        keep = (bq[:, None] == bk[None, :]) & (hq[:, None] == hk[None, :])
        if mask is not None:
            keep = keep & (mask[qi[:, None], ki[None, :]] > 0)
        return jnp.where(keep, 0.0, -1e9).astype(jnp.float32)

    return jnp.concatenate([block_bias(s_tgt, s_tgt, tgt_mask),
                            block_bias(s_tgt, s_mem, src_mask)], axis=1)


# ------------------------------------------ wrapper ---------------------------------------------

def decoder_layer_pallas(x, memory, bias_slab, prep, n_heads, *, approx_recip=True):
    B, S, D = x.shape
    _, Sm, _ = memory.shape
    DFF = prep["d_ff"]
    assert prep["d_model"] == D

    # Batch folded into M: one activation slab [B*S + B*Sm, D] (x rows then memory rows).
    acts = jnp.concatenate([x.reshape(B * S, D), memory.reshape(B * Sm, D)],
                           axis=0).astype(jnp.float32)

    kernel = functools.partial(
        _decoder_layer_kernel, n_batch=B, s_tgt=S, s_mem=Sm, d_model=D, d_ff=DFF,
        n_heads=n_heads, approx_recip=approx_recip)

    # Single grid step (no grid): the whole problem fits in VMEM, each of the 5 inputs
    # is DMA'd exactly once (whole arrays default to VMEM blocks), and there is no
    # per-step pipeline overhead or weight double-buffering.
    # TODO(synk): at production sizes add a K-tiled "arbitrary" grid axis + VMEM f32
    #             accumulator for the FFN matmuls (v7x 64 MiB VMEM budget) and alias x
    #             to the output (input_output_aliases) once the caller donates it.
    out2d = pl.pallas_call(
        kernel,
        out_shape=jax.ShapeDtypeStruct((B * S, D), x.dtype),
        compiler_params=pltpu.CompilerParams(vmem_limit_bytes=32 * 1024 * 1024),
    )(acts, bias_slab, prep["wd"], prep["w2"], prep["vec"])
    return out2d.reshape(B, S, D)


# ---------------------------------------- pure-JAX reference ------------------------------------

def decoder_layer_ref(x, memory, tgt_mask, params, n_heads):
    """Canonical per-head math with the original (unfused, unscaled) parameters."""
    p = params

    def mha(q_in, kv_in, wq, bq, wk, bk, wv, bv, wo, bo, mask):
        q = q_in @ wq + bq
        k = kv_in @ wk + bk
        v = kv_in @ wv + bv
        S, D = q.shape
        Sk = k.shape[0]
        dh = D // n_heads
        qh = q.reshape(S, n_heads, dh).transpose(1, 0, 2)
        kh = k.reshape(Sk, n_heads, dh).transpose(1, 0, 2)
        vh = v.reshape(Sk, n_heads, dh).transpose(1, 0, 2)
        s = jnp.einsum('hqd,hkd->hqk', qh, kh) / math.sqrt(dh)
        if mask is not None:
            s = jnp.where(mask[None, :, :] > 0, s, -1e9)
        pr = jax.nn.softmax(s, axis=-1)
        ctx = jnp.einsum('hqk,hkd->hqd', pr, vh)
        return ctx.transpose(1, 0, 2).reshape(S, D) @ wo + bo

    def one(xb, mb):
        xb = xb.astype(jnp.float32)
        mb = mb.astype(jnp.float32)
        sa = mha(xb, xb, p["wq1"], p["bq1"], p["wk1"], p["bk1"],
                 p["wv1"], p["bv1"], p["wo1"], p["bo1"], tgt_mask)
        xb = xb + _layernorm(sa, p["g1"], p["be1"])
        ca = mha(xb, mb, p["wq2"], p["bq2"], p["wk2"], p["bk2"],
                 p["wv2"], p["bv2"], p["wo2"], p["bo2"], None)
        xb = xb + _layernorm(ca, p["g2"], p["be2"])
        h = jnp.maximum(xb @ p["w1"] + p["b1"], 0.0)
        ff = h @ p["w2"] + p["b2"]
        return xb + _layernorm(ff, p["g3"], p["be3"])

    return jax.vmap(one)(x, memory).astype(x.dtype)


# ----------------------------------------------- main -------------------------------------------

if __name__ == "__main__":
    B, S, Sm = 2, 8, 8          # batch, target seq, source (memory) seq
    D, H, DFF = 32, 4, 64       # d_model, n_heads, d_ff
    # dropout = 0.1 in the module; identity at inference, so omitted.

    key = jax.random.PRNGKey(0)
    kit = iter(jax.random.split(key, 32))

    def w(k, shape, scale=0.02):
        return (scale * jax.random.normal(k, shape)).astype(jnp.float32)

    params = {
        # self-attention
        "wq1": w(next(kit), (D, D)), "bq1": w(next(kit), (1, D)),
        "wk1": w(next(kit), (D, D)), "bk1": w(next(kit), (1, D)),
        "wv1": w(next(kit), (D, D)), "bv1": w(next(kit), (1, D)),
        "wo1": w(next(kit), (D, D)), "bo1": w(next(kit), (1, D)),
        # cross-attention
        "wq2": w(next(kit), (D, D)), "bq2": w(next(kit), (1, D)),
        "wk2": w(next(kit), (D, D)), "bk2": w(next(kit), (1, D)),
        "wv2": w(next(kit), (D, D)), "bv2": w(next(kit), (1, D)),
        "wo2": w(next(kit), (D, D)), "bo2": w(next(kit), (1, D)),
        # feed-forward
        "w1": w(next(kit), (D, DFF)), "b1": w(next(kit), (1, DFF)),
        "w2": w(next(kit), (DFF, D)), "b2": w(next(kit), (1, D)),
        # layer norms
        "g1": 1.0 + w(next(kit), (1, D)), "be1": w(next(kit), (1, D)),
        "g2": 1.0 + w(next(kit), (1, D)), "be2": w(next(kit), (1, D)),
        "g3": 1.0 + w(next(kit), (1, D)), "be3": w(next(kit), (1, D)),
    }

    x = jax.random.normal(next(kit), (B, S, D), jnp.float32)
    memory = jax.random.normal(next(kit), (B, Sm, D), jnp.float32)
    tgt_mask = jnp.tril(jnp.ones((S, S), jnp.float32))   # 1.0 = attend, 0.0 = masked

    # One-time packing (hoisted out of the forward call, per review).
    bias_slab = prepare_attention_bias(tgt_mask, B, S, Sm, H)

    # Exact-f32 configuration: validates the packed-heads / fused-slab rewrite tightly.
    prep_f32 = prepare_decoder_params(params, H, matmul_dtype=jnp.float32)
    out_exact = decoder_layer_pallas(x, memory, bias_slab, prep_f32, H,
                                     approx_recip=False)
    out_exact = jax.block_until_ready(out_exact)

    # Performance configuration: bf16 MXU operands + EUP approximate reciprocal.
    prep_bf16 = prepare_decoder_params(params, H, matmul_dtype=jnp.bfloat16)
    out_fast = decoder_layer_pallas(x, memory, bias_slab, prep_bf16, H,
                                    approx_recip=True)
    out_fast = jax.block_until_ready(out_fast)

    ref = decoder_layer_ref(x, memory, tgt_mask, params, H)
    assert out_exact.shape == (B, S, D) and out_fast.shape == (B, S, D)
    assert jnp.allclose(out_exact, ref, atol=1e-4, rtol=1e-4), \
        "Pallas (exact f32) mismatch vs JAX reference"
    assert jnp.allclose(out_fast, ref, atol=1e-1, rtol=1e-1), \
        "Pallas (bf16 + approx reciprocal) mismatch vs JAX reference"

    print("KERNEL_OK")
</pallas_src>

<mosaic_0001>
module attributes {stable_mosaic.version = 11 : i64} {
  func.func @_decoder_layer_kernel(%arg0: memref<32x32xf32, #tpu.memory_space<vmem>>, %arg1: memref<64x128xf32, #tpu.memory_space<vmem>>, %arg2: memref<32x320xf32, #tpu.memory_space<vmem>>, %arg3: memref<64x32xf32, #tpu.memory_space<vmem>>, %arg4: memref<16x64xf32, #tpu.memory_space<vmem>>, %arg5: memref<16x32xf32, #tpu.memory_space<vmem>>) attributes {dimension_semantics = [], scalar_prefetch = 0 : i64, scratch_operands = 0 : i64, tpu.core_type = #tpu.core_type<tc>} {
    %c0 = arith.constant 0 : index
    %c0_0 = arith.constant 0 : index
    %0 = vector.load %arg0[%c0, %c0_0] : memref<32x32xf32, #tpu.memory_space<vmem>>, vector<32x32xf32>
    %1 = vector.extract_strided_slice %0 {offsets = [0, 0], sizes = [16, 32], strides = [1, 1]} : vector<32x32xf32> to vector<16x32xf32>
    %2 = vector.extract_strided_slice %0 {offsets = [16, 0], sizes = [16, 32], strides = [1, 1]} : vector<32x32xf32> to vector<16x32xf32>
    %c0_1 = arith.constant 0 : index
    %c0_2 = arith.constant 0 : index
    %3 = vector.load %arg2[%c0_1, %c0_2] : memref<32x320xf32, #tpu.memory_space<vmem>>, vector<32x320xf32>
    %c0_3 = arith.constant 0 : index
    %c0_4 = arith.constant 0 : index
    %4 = vector.load %arg3[%c0_3, %c0_4] : memref<64x32xf32, #tpu.memory_space<vmem>>, vector<64x32xf32>
    %c0_5 = arith.constant 0 : index
    %c0_6 = arith.constant 0 : index
    %5 = vector.load %arg4[%c0_5, %c0_6] : memref<16x64xf32, #tpu.memory_space<vmem>>, vector<16x64xf32>
    %c0_7 = arith.constant 0 : index
    %c0_8 = arith.constant 0 : index
    %6 = vector.load %arg1[%c0_7, %c0_8] : memref<64x128xf32, #tpu.memory_space<vmem>>, vector<64x128xf32>
    %7 = vector.extract_strided_slice %6 {offsets = [0, 0], sizes = [64, 64], strides = [1, 1]} : vector<64x128xf32> to vector<64x64xf32>
    %8 = vector.extract_strided_slice %6 {offsets = [0, 64], sizes = [64, 64], strides = [1, 1]} : vector<64x128xf32> to vector<64x64xf32>
    %9 = vector.extract_strided_slice %3 {offsets = [0, 0], sizes = [32, 96], strides = [1, 1]} : vector<32x320xf32> to vector<32x96xf32>
    %10 = vector.extract_strided_slice %3 {offsets = [0, 96], sizes = [32, 32], strides = [1, 1]} : vector<32x320xf32> to vector<32x32xf32>
    %11 = vector.extract_strided_slice %3 {offsets = [0, 128], sizes = [32, 32], strides = [1, 1]} : vector<32x320xf32> to vector<32x32xf32>
    %12 = vector.extract_strided_slice %3 {offsets = [0, 160], sizes = [32, 64], strides = [1, 1]} : vector<32x320xf32> to vector<32x64xf32>
    %13 = vector.extract_strided_slice %3 {offsets = [0, 224], sizes = [32, 32], strides = [1, 1]} : vector<32x320xf32> to vector<32x32xf32>
    %14 = vector.extract_strided_slice %3 {offsets = [0, 256], sizes = [32, 64], strides = [1, 1]} : vector<32x320xf32> to vector<32x64xf32>
    %cst = arith.constant dense<0.000000e+00> : vector<16x96xf32>
    %15 = tpu.matmul %1, %9, %cst {dimension_numbers = #tpu.dot_dimension_numbers<[1], [0], [0], [1], [0, 0, 1, 1], [], []>} : vector<16x32xf32>, vector<32x96xf32>, vector<16x96xf32> -> vector<16x96xf32>
    %16 = vector.extract_strided_slice %15 {offsets = [0, 0], sizes = [16, 32], strides = [1, 1]} : vector<16x96xf32> to vector<16x32xf32>
    %17 = vector.extract_strided_slice %5 {offsets = [0, 0], sizes = [1, 32], strides = [1, 1]} : vector<16x64xf32> to vector<1x32xf32>
    %18 = vector.broadcast %17 : vector<1x32xf32> to vector<16x32xf32>
    %19 = arith.addf %16, %18 : vector<16x32xf32>
    %20 = vector.extract_strided_slice %15 {offsets = [0, 32], sizes = [16, 32], strides = [1, 1]} : vector<16x96xf32> to vector<16x32xf32>
    %21 = vector.extract_strided_slice %5 {offsets = [1, 0], sizes = [1, 32], strides = [1, 1]} : vector<16x64xf32> to vector<1x32xf32>
    %22 = vector.broadcast %21 : vector<1x32xf32> to vector<16x32xf32>
    %23 = arith.addf %20, %22 : vector<16x32xf32>
    %24 = vector.extract_strided_slice %15 {offsets = [0, 64], sizes = [16, 32], strides = [1, 1]} : vector<16x96xf32> to vector<16x32xf32>
    %25 = vector.extract_strided_slice %5 {offsets = [2, 0], sizes = [1, 32], strides = [1, 1]} : vector<16x64xf32> to vector<1x32xf32>
    %26 = vector.broadcast %25 : vector<1x32xf32> to vector<16x32xf32>
    %27 = arith.addf %24, %26 : vector<16x32xf32>
    %28 = vector.extract_strided_slice %19 {offsets = [0, 0], sizes = [8, 8], strides = [1, 1]} : vector<16x32xf32> to vector<8x8xf32>
    %29 = vector.extract_strided_slice %19 {offsets = [0, 8], sizes = [8, 8], strides = [1, 1]} : vector<16x32xf32> to vector<8x8xf32>
    %30 = vector.extract_strided_slice %19 {offsets = [0, 16], sizes = [8, 8], strides = [1, 1]} : vector<16x32xf32> to vector<8x8xf32>
    %31 = vector.extract_strided_slice %19 {offsets = [0, 24], sizes = [8, 8], strides = [1, 1]} : vector<16x32xf32> to vector<8x8xf32>
    %32 = vector.extract_strided_slice %19 {offsets = [8, 0], sizes = [8, 8], strides = [1, 1]} : vector<16x32xf32> to vector<8x8xf32>
    %33 = vector.extract_strided_slice %19 {offsets = [8, 8], sizes = [8, 8], strides = [1, 1]} : vector<16x32xf32> to vector<8x8xf32>
    %34 = vector.extract_strided_slice %19 {offsets = [8, 16], sizes = [8, 8], strides = [1, 1]} : vector<16x32xf32> to vector<8x8xf32>
    %35 = vector.extract_strided_slice %19 {offsets = [8, 24], sizes = [8, 8], strides = [1, 1]} : vector<16x32xf32> to vector<8x8xf32>
    %36 = tpu.concatenate %28, %29, %30, %31, %32, %33, %34, %35 in 0 : vector<8x8xf32>, vector<8x8xf32>, vector<8x8xf32>, vector<8x8xf32>, vector<8x8xf32>, vector<8x8xf32>, vector<8x8xf32>, vector<8x8xf32> -> vector<64x8xf32>
    %37 = vector.extract_strided_slice %23 {offsets = [0, 0], sizes = [8, 8], strides = [1, 1]} : vector<16x32xf32> to vector<8x8xf32>
    %38 = vector.extract_strided_slice %23 {offsets = [0, 8], sizes = [8, 8], strides = [1, 1]} : vector<16x32xf32> to vector<8x8xf32>
    %39 = vector.extract_strided_slice %23 {offsets = [0, 16], sizes = [8, 8], strides = [1, 1]} : vector<16x32xf32> to vector<8x8xf32>
    %40 = vector.extract_strided_slice %23 {offsets = [0, 24], sizes = [8, 8], strides = [1, 1]} : vector<16x32xf32> to vector<8x8xf32>
    %41 = vector.extract_strided_slice %23 {offsets = [8, 0], sizes = [8, 8], strides = [1, 1]} : vector<16x32xf32> to vector<8x8xf32>
    %42 = vector.extract_strided_slice %23 {offsets = [8, 8], sizes = [8, 8], strides = [1, 1]} : vector<16x32xf32> to vector<8x8xf32>
    %43 = vector.extract_strided_slice %23 {offsets = [8, 16], sizes = [8, 8], strides = [1, 1]} : vector<16x32xf32> to vector<8x8xf32>
    %44 = vector.extract_strided_slice %23 {offsets = [8, 24], sizes = [8, 8], strides = [1, 1]} : vector<16x32xf32> to vector<8x8xf32>
    %45 = tpu.concatenate %37, %38, %39, %40, %41, %42, %43, %44 in 0 : vector<8x8xf32>, vector<8x8xf32>, vector<8x8xf32>, vector<8x8xf32>, vector<8x8xf32>, vector<8x8xf32>, vector<8x8xf32>, vector<8x8xf32> -> vector<64x8xf32>
    %46 = vector.extract_strided_slice %27 {offsets = [0, 0], sizes = [8, 8], strides = [1, 1]} : vector<16x32xf32> to vector<8x8xf32>
    %47 = vector.extract_strided_slice %27 {offsets = [0, 8], sizes = [8, 8], strides = [1, 1]} : vector<16x32xf32> to vector<8x8xf32>
    %48 = vector.extract_strided_slice %27 {offsets = [0, 16], sizes = [8, 8], strides = [1, 1]} : vector<16x32xf32> to vector<8x8xf32>
    %49 = vector.extract_strided_slice %27 {offsets = [0, 24], sizes = [8, 8], strides = [1, 1]} : vector<16x32xf32> to vector<8x8xf32>
    %50 = vector.extract_strided_slice %27 {offsets = [8, 0], sizes = [8, 8], strides = [1, 1]} : vector<16x32xf32> to vector<8x8xf32>
    %51 = vector.extract_strided_slice %27 {offsets = [8, 8], sizes = [8, 8], strides = [1, 1]} : vector<16x32xf32> to vector<8x8xf32>
    %52 = vector.extract_strided_slice %27 {offsets = [8, 16], sizes = [8, 8], strides = [1, 1]} : vector<16x32xf32> to vector<8x8xf32>
    %53 = vector.extract_strided_slice %27 {offsets = [8, 24], sizes = [8, 8], strides = [1, 1]} : vector<16x32xf32> to vector<8x8xf32>
    %54 = tpu.concatenate %46, %47, %48, %49, %50, %51, %52, %53 in 0 : vector<8x8xf32>, vector<8x8xf32>, vector<8x8xf32>, vector<8x8xf32>, vector<8x8xf32>, vector<8x8xf32>, vector<8x8xf32>, vector<8x8xf32> -> vector<64x8xf32>
    %55 = tpu.transpose %45, [1, 0] : vector<64x8xf32> -> vector<8x64xf32>
    %cst_9 = arith.constant dense<0.000000e+00> : vector<64x64xf32>
    %56 = tpu.matmul %36, %55, %cst_9 {dimension_numbers = #tpu.dot_dimension_numbers<[1], [0], [0], [1], [0, 0, 1, 1], [], []>} : vector<64x8xf32>, vector<8x64xf32>, vector<64x64xf32> -> vector<64x64xf32>
    %57 = arith.addf %56, %7 : vector<64x64xf32>
    %cst_10 = arith.constant dense<0xFF800000> : vector<64xf32>
    %58 = vector.multi_reduction <maximumf>, %57, %cst_10 [1] : vector<64x64xf32> to vector<64xf32>
    %59 = vector.shape_cast %58 : vector<64xf32> to vector<64x1xf32>
    %60 = vector.broadcast %59 : vector<64x1xf32> to vector<64x64xf32>
    %61 = arith.subf %57, %60 : vector<64x64xf32>
    %62 = math.exp %61 : vector<64x64xf32>
    %cst_11 = arith.constant dense<0.000000e+00> : vector<64xf32>
    %63 = vector.multi_reduction <add>, %62, %cst_11 [1] : vector<64x64xf32> to vector<64xf32>
    %64 = vector.shape_cast %63 : vector<64xf32> to vector<64x1xf32>
    %65 = vector.broadcast %64 : vector<64x1xf32> to vector<64x64xf32>
    %66 = arith.divf %62, %65 : vector<64x64xf32>
    %cst_12 = arith.constant dense<0.000000e+00> : vector<64x8xf32>
    %67 = tpu.matmul %66, %54, %cst_12 {dimension_numbers = #tpu.dot_dimension_numbers<[1], [0], [0], [1], [0, 0, 1, 1], [], []>} : vector<64x64xf32>, vector<64x8xf32>, vector<64x8xf32> -> vector<64x8xf32>
    %68 = vector.extract_strided_slice %67 {offsets = [0, 0], sizes = [8, 8], strides = [1, 1]} : vector<64x8xf32> to vector<8x8xf32>
    %69 = vector.extract_strided_slice %67 {offsets = [8, 0], sizes = [8, 8], strides = [1, 1]} : vector<64x8xf32> to vector<8x8xf32>
    %70 = vector.extract_strided_slice %67 {offsets = [16, 0], sizes = [8, 8], strides = [1, 1]} : vector<64x8xf32> to vector<8x8xf32>
    %71 = vector.extract_strided_slice %67 {offsets = [24, 0], sizes = [8, 8], strides = [1, 1]} : vector<64x8xf32> to vector<8x8xf32>
    %72 = tpu.concatenate %68, %69, %70, %71 in 1 : vector<8x8xf32>, vector<8x8xf32>, vector<8x8xf32>, vector<8x8xf32> -> vector<8x32xf32>
    %73 = vector.extract_strided_slice %67 {offsets = [32, 0], sizes = [8, 8], strides = [1, 1]} : vector<64x8xf32> to vector<8x8xf32>
    %74 = vector.extract_strided_slice %67 {offsets = [40, 0], sizes = [8, 8], strides = [1, 1]} : vector<64x8xf32> to vector<8x8xf32>
    %75 = vector.extract_strided_slice %67 {offsets = [48, 0], sizes = [8, 8], strides = [1, 1]} : vector<64x8xf32> to vector<8x8xf32>
    %76 = vector.extract_strided_slice %67 {offsets = [56, 0], sizes = [8, 8], strides = [1, 1]} : vector<64x8xf32> to vector<8x8xf32>
    %77 = tpu.concatenate %73, %74, %75, %76 in 1 : vector<8x8xf32>, vector<8x8xf32>, vector<8x8xf32>, vector<8x8xf32> -> vector<8x32xf32>
    %78 = tpu.concatenate %72, %77 in 0 : vector<8x32xf32>, vector<8x32xf32> -> vector<16x32xf32>
    %cst_13 = arith.constant dense<0.000000e+00> : vector<16x32xf32>
    %79 = tpu.matmul %78, %10, %cst_13 {dimension_numbers = #tpu.dot_dimension_numbers<[1], [0], [0], [1], [0, 0, 1, 1], [], []>} : vector<16x32xf32>, vector<32x32xf32>, vector<16x32xf32> -> vector<16x32xf32>
    %80 = vector.extract_strided_slice %5 {offsets = [3, 0], sizes = [1, 32], strides = [1, 1]} : vector<16x64xf32> to vector<1x32xf32>
    %81 = vector.broadcast %80 : vector<1x32xf32> to vector<16x32xf32>
    %82 = arith.addf %79, %81 : vector<16x32xf32>
    %83 = vector.extract_strided_slice %5 {offsets = [10, 0], sizes = [1, 32], strides = [1, 1]} : vector<16x64xf32> to vector<1x32xf32>
    %84 = vector.extract_strided_slice %5 {offsets = [11, 0], sizes = [1, 32], strides = [1, 1]} : vector<16x64xf32> to vector<1x32xf32>
    %cst_14 = arith.constant dense<0.000000e+00> : vector<16xf32>
    %85 = vector.multi_reduction <add>, %82, %cst_14 [1] : vector<16x32xf32> to vector<16xf32>
    %86 = vector.shape_cast %85 : vector<16xf32> to vector<16x1xf32>
    %cst_15 = arith.constant 3.200000e+01 : f32
    %87 = vector.broadcast %cst_15 : f32 to vector<16x1xf32>
    %88 = arith.divf %86, %87 : vector<16x1xf32>
    %89 = vector.broadcast %88 : vector<16x1xf32> to vector<16x32xf32>
    %90 = arith.subf %82, %89 : vector<16x32xf32>
    %91 = arith.mulf %90, %90 : vector<16x32xf32>
    %cst_16 = arith.constant dense<0.000000e+00> : vector<16xf32>
    %92 = vector.multi_reduction <add>, %91, %cst_16 [1] : vector<16x32xf32> to vector<16xf32>
    %93 = vector.shape_cast %92 : vector<16xf32> to vector<16x1xf32>
    %cst_17 = arith.constant 3.200000e+01 : f32
    %94 = vector.broadcast %cst_17 : f32 to vector<16x1xf32>
    %95 = arith.divf %93, %94 : vector<16x1xf32>
    %96 = vector.broadcast %88 : vector<16x1xf32> to vector<16x32xf32>
    %97 = arith.subf %82, %96 : vector<16x32xf32>
    %98 = vector.broadcast %83 : vector<1x32xf32> to vector<16x32xf32>
    %99 = arith.mulf %98, %97 : vector<16x32xf32>
    %cst_18 = arith.constant 9.99999997E-7 : f32
    %100 = vector.broadcast %cst_18 : f32 to vector<16x1xf32>
    %101 = arith.addf %95, %100 : vector<16x1xf32>
    %102 = math.rsqrt %101 : vector<16x1xf32>
    %103 = vector.broadcast %102 : vector<16x1xf32> to vector<16x32xf32>
    %104 = arith.mulf %99, %103 : vector<16x32xf32>
    %105 = vector.broadcast %84 : vector<1x32xf32> to vector<16x32xf32>
    %106 = arith.addf %104, %105 : vector<16x32xf32>
    %107 = arith.addf %1, %106 : vector<16x32xf32>
    %cst_19 = arith.constant dense<0.000000e+00> : vector<16x32xf32>
    %108 = tpu.matmul %107, %11, %cst_19 {dimension_numbers = #tpu.dot_dimension_numbers<[1], [0], [0], [1], [0, 0, 1, 1], [], []>} : vector<16x32xf32>, vector<32x32xf32>, vector<16x32xf32> -> vector<16x32xf32>
    %109 = vector.extract_strided_slice %5 {offsets = [4, 0], sizes = [1, 32], strides = [1, 1]} : vector<16x64xf32> to vector<1x32xf32>
    %110 = vector.broadcast %109 : vector<1x32xf32> to vector<16x32xf32>
    %111 = arith.addf %108, %110 : vector<16x32xf32>
    %cst_20 = arith.constant dense<0.000000e+00> : vector<16x64xf32>
    %112 = tpu.matmul %2, %12, %cst_20 {dimension_numbers = #tpu.dot_dimension_numbers<[1], [0], [0], [1], [0, 0, 1, 1], [], []>} : vector<16x32xf32>, vector<32x64xf32>, vector<16x64xf32> -> vector<16x64xf32>
    %113 = vector.extract_strided_slice %112 {offsets = [0, 0], sizes = [16, 32], strides = [1, 1]} : vector<16x64xf32> to vector<16x32xf32>
    %114 = vector.extract_strided_slice %5 {offsets = [5, 0], sizes = [1, 32], strides = [1, 1]} : vector<16x64xf32> to vector<1x32xf32>
    %115 = vector.broadcast %114 : vector<1x32xf32> to vector<16x32xf32>
    %116 = arith.addf %113, %115 : vector<16x32xf32>
    %117 = vector.extract_strided_slice %112 {offsets = [0, 32], sizes = [16, 32], strides = [1, 1]} : vector<16x64xf32> to vector<16x32xf32>
    %118 = vector.extract_strided_slice %5 {offsets = [6, 0], sizes = [1, 32], strides = [1, 1]} : vector<16x64xf32> to vector<1x32xf32>
    %119 = vector.broadcast %118 : vector<1x32xf32> to vector<16x32xf32>
    %120 = arith.addf %117, %119 : vector<16x32xf32>
    %121 = vector.extract_strided_slice %111 {offsets = [0, 0], sizes = [8, 8], strides = [1, 1]} : vector<16x32xf32> to vector<8x8xf32>
    %122 = vector.extract_strided_slice %111 {offsets = [0, 8], sizes = [8, 8], strides = [1, 1]} : vector<16x32xf32> to vector<8x8xf32>
    %123 = vector.extract_strided_slice %111 {offsets = [0, 16], sizes = [8, 8], strides = [1, 1]} : vector<16x32xf32> to vector<8x8xf32>
    %124 = vector.extract_strided_slice %111 {offsets = [0, 24], sizes = [8, 8], strides = [1, 1]} : vector<16x32xf32> to vector<8x8xf32>
    %125 = vector.extract_strided_slice %111 {offsets = [8, 0], sizes = [8, 8], strides = [1, 1]} : vector<16x32xf32> to vector<8x8xf32>
    %126 = vector.extract_strided_slice %111 {offsets = [8, 8], sizes = [8, 8], strides = [1, 1]} : vector<16x32xf32> to vector<8x8xf32>
    %127 = vector.extract_strided_slice %111 {offsets = [8, 16], sizes = [8, 8], strides = [1, 1]} : vector<16x32xf32> to vector<8x8xf32>
    %128 = vector.extract_strided_slice %111 {offsets = [8, 24], sizes = [8, 8], strides = [1, 1]} : vector<16x32xf32> to vector<8x8xf32>
    %129 = tpu.concatenate %121, %122, %123, %124, %125, %126, %127, %128 in 0 : vector<8x8xf32>, vector<8x8xf32>, vector<8x8xf32>, vector<8x8xf32>, vector<8x8xf32>, vector<8x8xf32>, vector<8x8xf32>, vector<8x8xf32> -> vector<64x8xf32>
    %130 = vector.extract_strided_slice %116 {offsets = [0, 0], sizes = [8, 8], strides = [1, 1]} : vector<16x32xf32> to vector<8x8xf32>
    %131 = vector.extract_strided_slice %116 {offsets = [0, 8], sizes = [8, 8], strides = [1, 1]} : vector<16x32xf32> to vector<8x8xf32>
    %132 = vector.extract_strided_slice %116 {offsets = [0, 16], sizes = [8, 8], strides = [1, 1]} : vector<16x32xf32> to vector<8x8xf32>
    %133 = vector.extract_strided_slice %116 {offsets = [0, 24], sizes = [8, 8], strides = [1, 1]} : vector<16x32xf32> to vector<8x8xf32>
    %134 = vector.extract_strided_slice %116 {offsets = [8, 0], sizes = [8, 8], strides = [1, 1]} : vector<16x32xf32> to vector<8x8xf32>
    %135 = vector.extract_strided_slice %116 {offsets = [8, 8], sizes = [8, 8], strides = [1, 1]} : vector<16x32xf32> to vector<8x8xf32>
    %136 = vector.extract_strided_slice %116 {offsets = [8, 16], sizes = [8, 8], strides = [1, 1]} : vector<16x32xf32> to vector<8x8xf32>
    %137 = vector.extract_strided_slice %116 {offsets = [8, 24], sizes = [8, 8], strides = [1, 1]} : vector<16x32xf32> to vector<8x8xf32>
    %138 = tpu.concatenate %130, %131, %132, %133, %134, %135, %136, %137 in 0 : vector<8x8xf32>, vector<8x8xf32>, vector<8x8xf32>, vector<8x8xf32>, vector<8x8xf32>, vector<8x8xf32>, vector<8x8xf32>, vector<8x8xf32> -> vector<64x8xf32>
    %139 = vector.extract_strided_slice %120 {offsets = [0, 0], sizes = [8, 8], strides = [1, 1]} : vector<16x32xf32> to vector<8x8xf32>
    %140 = vector.extract_strided_slice %120 {offsets = [0, 8], sizes = [8, 8], strides = [1, 1]} : vector<16x32xf32> to vector<8x8xf32>
    %141 = vector.extract_strided_slice %120 {offsets = [0, 16], sizes = [8, 8], strides = [1, 1]} : vector<16x32xf32> to vector<8x8xf32>
    %142 = vector.extract_strided_slice %120 {offsets = [0, 24], sizes = [8, 8], strides = [1, 1]} : vector<16x32xf32> to vector<8x8xf32>
    %143 = vector.extract_strided_slice %120 {offsets = [8, 0], sizes = [8, 8], strides = [1, 1]} : vector<16x32xf32> to vector<8x8xf32>
    %144 = vector.extract_strided_slice %120 {offsets = [8, 8], sizes = [8, 8], strides = [1, 1]} : vector<16x32xf32> to vector<8x8xf32>
    %145 = vector.extract_strided_slice %120 {offsets = [8, 16], sizes = [8, 8], strides = [1, 1]} : vector<16x32xf32> to vector<8x8xf32>
    %146 = vector.extract_strided_slice %120 {offsets = [8, 24], sizes = [8, 8], strides = [1, 1]} : vector<16x32xf32> to vector<8x8xf32>
    %147 = tpu.concatenate %139, %140, %141, %142, %143, %144, %145, %146 in 0 : vector<8x8xf32>, vector<8x8xf32>, vector<8x8xf32>, vector<8x8xf32>, vector<8x8xf32>, vector<8x8xf32>, vector<8x8xf32>, vector<8x8xf32> -> vector<64x8xf32>
    %148 = tpu.transpose %138, [1, 0] : vector<64x8xf32> -> vector<8x64xf32>
    %cst_21 = arith.constant dense<0.000000e+00> : vector<64x64xf32>
    %149 = tpu.matmul %129, %148, %cst_21 {dimension_numbers = #tpu.dot_dimension_numbers<[1], [0], [0], [1], [0, 0, 1, 1], [], []>} : vector<64x8xf32>, vector<8x64xf32>, vector<64x64xf32> -> vector<64x64xf32>
    %150 = arith.addf %149, %8 : vector<64x64xf32>
    %cst_22 = arith.constant dense<0xFF800000> : vector<64xf32>
    %151 = vector.multi_reduction <maximumf>, %150, %cst_22 [1] : vector<64x64xf32> to vector<64xf32>
    %152 = vector.shape_cast %151 : vector<64xf32> to vector<64x1xf32>
    %153 = vector.broadcast %152 : vector<64x1xf32> to vector<64x64xf32>
    %154 = arith.subf %150, %153 : vector<64x64xf32>
    %155 = math.exp %154 : vector<64x64xf32>
    %cst_23 = arith.constant dense<0.000000e+00> : vector<64xf32>
    %156 = vector.multi_reduction <add>, %155, %cst_23 [1] : vector<64x64xf32> to vector<64xf32>
    %157 = vector.shape_cast %156 : vector<64xf32> to vector<64x1xf32>
    %158 = vector.broadcast %157 : vector<64x1xf32> to vector<64x64xf32>
    %159 = arith.divf %155, %158 : vector<64x64xf32>
    %cst_24 = arith.constant dense<0.000000e+00> : vector<64x8xf32>
    %160 = tpu.matmul %159, %147, %cst_24 {dimension_numbers = #tpu.dot_dimension_numbers<[1], [0], [0], [1], [0, 0, 1, 1], [], []>} : vector<64x64xf32>, vector<64x8xf32>, vector<64x8xf32> -> vector<64x8xf32>
    %161 = vector.extract_strided_slice %160 {offsets = [0, 0], sizes = [8, 8], strides = [1, 1]} : vector<64x8xf32> to vector<8x8xf32>
    %162 = vector.extract_strided_slice %160 {offsets = [8, 0], sizes = [8, 8], strides = [1, 1]} : vector<64x8xf32> to vector<8x8xf32>
    %163 = vector.extract_strided_slice %160 {offsets = [16, 0], sizes = [8, 8], strides = [1, 1]} : vector<64x8xf32> to vector<8x8xf32>
    %164 = vector.extract_strided_slice %160 {offsets = [24, 0], sizes = [8, 8], strides = [1, 1]} : vector<64x8xf32> to vector<8x8xf32>
    %165 = tpu.concatenate %161, %162, %163, %164 in 1 : vector<8x8xf32>, vector<8x8xf32>, vector<8x8xf32>, vector<8x8xf32> -> vector<8x32xf32>
    %166 = vector.extract_strided_slice %160 {offsets = [32, 0], sizes = [8, 8], strides = [1, 1]} : vector<64x8xf32> to vector<8x8xf32>
    %167 = vector.extract_strided_slice %160 {offsets = [40, 0], sizes = [8, 8], strides = [1, 1]} : vector<64x8xf32> to vector<8x8xf32>
    %168 = vector.extract_strided_slice %160 {offsets = [48, 0], sizes = [8, 8], strides = [1, 1]} : vector<64x8xf32> to vector<8x8xf32>
    %169 = vector.extract_strided_slice %160 {offsets = [56, 0], sizes = [8, 8], strides = [1, 1]} : vector<64x8xf32> to vector<8x8xf32>
    %170 = tpu.concatenate %166, %167, %168, %169 in 1 : vector<8x8xf32>, vector<8x8xf32>, vector<8x8xf32>, vector<8x8xf32> -> vector<8x32xf32>
    %171 = tpu.concatenate %165, %170 in 0 : vector<8x32xf32>, vector<8x32xf32> -> vector<16x32xf32>
    %cst_25 = arith.constant dense<0.000000e+00> : vector<16x32xf32>
    %172 = tpu.matmul %171, %13, %cst_25 {dimension_numbers = #tpu.dot_dimension_numbers<[1], [0], [0], [1], [0, 0, 1, 1], [], []>} : vector<16x32xf32>, vector<32x32xf32>, vector<16x32xf32> -> vector<16x32xf32>
    %173 = vector.extract_strided_slice %5 {offsets = [7, 0], sizes = [1, 32], strides = [1, 1]} : vector<16x64xf32> to vector<1x32xf32>
    %174 = vector.broadcast %173 : vector<1x32xf32> to vector<16x32xf32>
    %175 = arith.addf %172, %174 : vector<16x32xf32>
    %176 = vector.extract_strided_slice %5 {offsets = [12, 0], sizes = [1, 32], strides = [1, 1]} : vector<16x64xf32> to vector<1x32xf32>
    %177 = vector.extract_strided_slice %5 {offsets = [13, 0], sizes = [1, 32], strides = [1, 1]} : vector<16x64xf32> to vector<1x32xf32>
    %cst_26 = arith.constant dense<0.000000e+00> : vector<16xf32>
    %178 = vector.multi_reduction <add>, %175, %cst_26 [1] : vector<16x32xf32> to vector<16xf32>
    %179 = vector.shape_cast %178 : vector<16xf32> to vector<16x1xf32>
    %cst_27 = arith.constant 3.200000e+01 : f32
    %180 = vector.broadcast %cst_27 : f32 to vector<16x1xf32>
    %181 = arith.divf %179, %180 : vector<16x1xf32>
    %182 = vector.broadcast %181 : vector<16x1xf32> to vector<16x32xf32>
    %183 = arith.subf %175, %182 : vector<16x32xf32>
    %184 = arith.mulf %183, %183 : vector<16x32xf32>
    %cst_28 = arith.constant dense<0.000000e+00> : vector<16xf32>
    %185 = vector.multi_reduction <add>, %184, %cst_28 [1] : vector<16x32xf32> to vector<16xf32>
    %186 = vector.shape_cast %185 : vector<16xf32> to vector<16x1xf32>
    %cst_29 = arith.constant 3.200000e+01 : f32
    %187 = vector.broadcast %cst_29 : f32 to vector<16x1xf32>
    %188 = arith.divf %186, %187 : vector<16x1xf32>
    %189 = vector.broadcast %181 : vector<16x1xf32> to vector<16x32xf32>
    %190 = arith.subf %175, %189 : vector<16x32xf32>
    %191 = vector.broadcast %176 : vector<1x32xf32> to vector<16x32xf32>
    %192 = arith.mulf %191, %190 : vector<16x32xf32>
    %cst_30 = arith.constant 9.99999997E-7 : f32
    %193 = vector.broadcast %cst_30 : f32 to vector<16x1xf32>
    %194 = arith.addf %188, %193 : vector<16x1xf32>
    %195 = math.rsqrt %194 : vector<16x1xf32>
    %196 = vector.broadcast %195 : vector<16x1xf32> to vector<16x32xf32>
    %197 = arith.mulf %192, %196 : vector<16x32xf32>
    %198 = vector.broadcast %177 : vector<1x32xf32> to vector<16x32xf32>
    %199 = arith.addf %197, %198 : vector<16x32xf32>
    %200 = arith.addf %107, %199 : vector<16x32xf32>
    %cst_31 = arith.constant dense<0.000000e+00> : vector<16x64xf32>
    %201 = tpu.matmul %200, %14, %cst_31 {dimension_numbers = #tpu.dot_dimension_numbers<[1], [0], [0], [1], [0, 0, 1, 1], [], []>} : vector<16x32xf32>, vector<32x64xf32>, vector<16x64xf32> -> vector<16x64xf32>
    %202 = vector.extract_strided_slice %5 {offsets = [8, 0], sizes = [1, 64], strides = [1, 1]} : vector<16x64xf32> to vector<1x64xf32>
    %203 = vector.broadcast %202 : vector<1x64xf32> to vector<16x64xf32>
    %204 = arith.addf %201, %203 : vector<16x64xf32>
    %cst_32 = arith.constant 0.000000e+00 : f32
    %205 = vector.broadcast %cst_32 : f32 to vector<16x64xf32>
    %206 = arith.maximumf %204, %205 : vector<16x64xf32>
    %cst_33 = arith.constant dense<0.000000e+00> : vector<16x32xf32>
    %207 = tpu.matmul %206, %4, %cst_33 {dimension_numbers = #tpu.dot_dimension_numbers<[1], [0], [0], [1], [0, 0, 1, 1], [], []>} : vector<16x64xf32>, vector<64x32xf32>, vector<16x32xf32> -> vector<16x32xf32>
    %208 = vector.extract_strided_slice %5 {offsets = [9, 0], sizes = [1, 32], strides = [1, 1]} : vector<16x64xf32> to vector<1x32xf32>
    %209 = vector.broadcast %208 : vector<1x32xf32> to vector<16x32xf32>
    %210 = arith.addf %207, %209 : vector<16x32xf32>
    %211 = vector.extract_strided_slice %5 {offsets = [14, 0], sizes = [1, 32], strides = [1, 1]} : vector<16x64xf32> to vector<1x32xf32>
    %212 = vector.extract_strided_slice %5 {offsets = [15, 0], sizes = [1, 32], strides = [1, 1]} : vector<16x64xf32> to vector<1x32xf32>
    %cst_34 = arith.constant dense<0.000000e+00> : vector<16xf32>
    %213 = vector.multi_reduction <add>, %210, %cst_34 [1] : vector<16x32xf32> to vector<16xf32>
    %214 = vector.shape_cast %213 : vector<16xf32> to vector<16x1xf32>
    %cst_35 = arith.constant 3.200000e+01 : f32
    %215 = vector.broadcast %cst_35 : f32 to vector<16x1xf32>
    %216 = arith.divf %214, %215 : vector<16x1xf32>
    %217 = vector.broadcast %216 : vector<16x1xf32> to vector<16x32xf32>
    %218 = arith.subf %210, %217 : vector<16x32xf32>
    %219 = arith.mulf %218, %218 : vector<16x32xf32>
    %cst_36 = arith.constant dense<0.000000e+00> : vector<16xf32>
    %220 = vector.multi_reduction <add>, %219, %cst_36 [1] : vector<16x32xf32> to vector<16xf32>
    %221 = vector.shape_cast %220 : vector<16xf32> to vector<16x1xf32>
    %cst_37 = arith.constant 3.200000e+01 : f32
    %222 = vector.broadcast %cst_37 : f32 to vector<16x1xf32>
    %223 = arith.divf %221, %222 : vector<16x1xf32>
    %224 = vector.broadcast %216 : vector<16x1xf32> to vector<16x32xf32>
    %225 = arith.subf %210, %224 : vector<16x32xf32>
    %226 = vector.broadcast %211 : vector<1x32xf32> to vector<16x32xf32>
    %227 = arith.mulf %226, %225 : vector<16x32xf32>
    %cst_38 = arith.constant 9.99999997E-7 : f32
    %228 = vector.broadcast %cst_38 : f32 to vector<16x1xf32>
    %229 = arith.addf %223, %228 : vector<16x1xf32>
    %230 = math.rsqrt %229 : vector<16x1xf32>
    %231 = vector.broadcast %230 : vector<16x1xf32> to vector<16x32xf32>
    %232 = arith.mulf %227, %231 : vector<16x32xf32>
    %233 = vector.broadcast %212 : vector<1x32xf32> to vector<16x32xf32>
    %234 = arith.addf %232, %233 : vector<16x32xf32>
    %235 = arith.addf %200, %234 : vector<16x32xf32>
    %c0_39 = arith.constant 0 : index
    %c0_40 = arith.constant 0 : index
    %236 = vector.load %arg5[%c0_39, %c0_40] : memref<16x32xf32, #tpu.memory_space<vmem>>, vector<16x32xf32>
    tpu.vector_store %arg5[%c0_39, %c0_40], %235 {strides = array<i32>} : memref<16x32xf32, #tpu.memory_space<vmem>>, vector<16x32xf32>,
    return
  }
}

</mosaic_0001>

<bundles_post_ra>
// kernel: tpu_custom_call.1
= control target key start
LH: loop header
LB: loop body
LE: loop exit
PB: predicated region body
PF: predicated region fallthrough
CT: control target
= control target key end

     0   :  { %10 = vsyncpa [#allocation3], 0  ;;  %s3295_s0 = inlined_call_operand.hbm [shape: f32[32,32], index: 0, kind: input, shape index: {}]   ;;  %s3296_s1 = inlined_call_operand.hbm [shape: f32[64,128], index: 1, kind: input, shape index: {}]   ;;  %s3297_s2 = inlined_call_operand.vmem [shape: f32[32,320], index: 2, kind: input, shape index: {}]   ;;  %s3298_s3 = inlined_call_operand.vmem [shape: f32[64,32], index: 3, kind: input, shape index: {}]   ;;  %s3299_s4 = inlined_call_operand.hbm [shape: f32[16,64], index: 4, kind: input, shape index: {}]   ;;  %s3300_s5 = inlined_call_operand.hbm [shape: f32[16,32], index: 5, kind: output, shape index: {}]  }
   0x1   :  { %11 = vsyncpa [#allocation6], 0 }
   0x2   :  { %12 = vsyncpa [#allocation4], 0  ;;  %s2683_s18 = smov [#allocation5]   ;;  %s2684_s20 = smov [#allocation2]  }
   0x3   :  { %s30_s19 = sshll.u32 %s2683_s18, 4  ;;  %s18_s21 = sshll.u32 %s2684_s20, 4  ;;  %s31_s19 = int_to_ptr.vmem [resolvable:$true] %s30_s19  ;;  %s2727_s21 = int_to_ptr.vmem [resolvable:$true] %s18_s21 }
   0x4   :  { %s2589_s24 = scalar_lea.hbm %s3296_s1, 1024 }
   0x5   :  { %p2590_p0 = scmp.ne.s32.totalorder %s3296_s1, %s2589_s24  ;;  %p2593_p1 = scmp.lt.u32.totalorder %s2589_s24, %s3296_s1 }
   0x7   :  { %p2595_p2 = pnand %p2593_p1, %p2590_p0 }
   0x9   :  { %2598 = shalt.err (!%p2595_p2)
}
   0xa   :  { %s2599_s29 = scalar_lea.vmem %s31_s19, 1024  ;;  %p2604_p4 = scmp.lt.s32.totalorder %s31_s19, %s31_s19 }
   0xb   :  { %p2600_p3 = scmp.ne.s32.totalorder %s31_s19, %s2599_s29  ;;  %p2605_p5 = scmp.lt.s32.totalorder %s2599_s29, %s2599_s29 }
   0xd   :  { %p2606_p6 = por %p2605_p5, %p2604_p4 }
   0xf   :  { %p2607_p7 = pnand %p2606_p6, %p2600_p3 }
  0x11   :  { %2610 = shalt.err (!%p2607_p7)
}
  0x12   :  { %s2685_s30 = smov 128   ;;  %s2686_s6 = smov 8  }
  0x13   :  { %36 = dma.hbm_to_vmem [thread:$0]  %s3296_s1, 1024, %s31_s19, [#allocation6], %s2685_s30, %s2685_s30, %s2686_s6  }
  0x14   :  { %s2611_s11 = scalar_lea.hbm %s3295_s0, 512 }
  0x15   :  { %p2612_p8 = scmp.ne.s32.totalorder %s3295_s0, %s2611_s11  ;;  %p2615_p9 = scmp.lt.u32.totalorder %s2611_s11, %s3295_s0 }
  0x17   :  { %p2617_p10 = pnand %p2615_p9, %p2612_p8 }
  0x19   :  { %2620 = shalt.err (!%p2617_p10)
}
  0x1a   :  { %s2621_s16 = scalar_lea.vmem %s2727_s21, 512  ;;  %p2626_p12 = scmp.lt.s32.totalorder %s2727_s21, %s2727_s21 }
  0x1b   :  { %p2622_p11 = scmp.ne.s32.totalorder %s2727_s21, %s2621_s16  ;;  %p2627_p13 = scmp.lt.s32.totalorder %s2621_s16, %s2621_s16 }
  0x1d   :  { %p2628_p0 = por %p2627_p13, %p2626_p12 }
  0x1f   :  { %p2629_p1 = pnand %p2628_p0, %p2622_p11 }
  0x21   :  { %2632 = shalt.err (!%p2629_p1)
}
  0x22   :  { %24 = dma.hbm_to_vmem [thread:$0]  %s3295_s0, 512, %s2727_s21, [#allocation3], %s2685_s30, %s2685_s30, %s2686_s6  }
  0x23   :  { %s2687_s18 = smov [#allocation7]   ;;  %s2633_s23 = scalar_lea.hbm %s3299_s4, 256 }
  0x24   :  { %s46_s19 = sshll.u32 %s2687_s18, 4  ;;  %p2634_p2 = scmp.ne.s32.totalorder %s3299_s4, %s2633_s23  ;;  %s47_s19 = int_to_ptr.vmem [resolvable:$true] %s46_s19 }
  0x25   :  { %p2637_p3 = scmp.lt.u32.totalorder %s2633_s23, %s3299_s4 }
  0x27   :  { %p2639_p4 = pnand %p2637_p3, %p2634_p2 }
  0x29   :  { %2642 = shalt.err (!%p2639_p4)
}
  0x2a   :  { %s2643_s28 = scalar_lea.vmem %s47_s19, 256  ;;  %p2648_p6 = scmp.lt.s32.totalorder %s47_s19, %s47_s19 }
  0x2b   :  { %p2644_p5 = scmp.ne.s32.totalorder %s47_s19, %s2643_s28  ;;  %p2649_p7 = scmp.lt.s32.totalorder %s2643_s28, %s2643_s28 }
  0x2d   :  { %p2650_p8 = por %p2649_p7, %p2648_p6 }
  0x2f   :  { %p2651_p9 = pnand %p2650_p8, %p2644_p5 }
  0x31   :  { %2654 = shalt.err (!%p2651_p9)
}
  0x32   :  { %52 = dma.hbm_to_vmem [thread:$0]  %s3299_s4, 256, %s47_s19, [#allocation6], %s2685_s30, %s2685_s30, %s2686_s6  }
  0x33   :  { %2677 = dma.done.wait [#allocation3], 512  }
  0x34   :  { %2678 = vsyncadd [#allocation3], 4294966784 }
  0x35   :  { %2679 = dma.done.wait [#allocation6], 1280  }
  0x36   :  { %2680 = vsyncadd [#allocation6], 4294966016  ;;  %v178_v0 = vlaneseq  ;;  %vm96_vm0 = vcmask 261120   ;;  %v2785_v3 = vld [vmem:[%s3297_s2] sm:$0xff]  ;;  %v2790_v4 = vld [vmem:[%s3297_s2 + $0x18] sm:$0xff]  ;;  %s2688_s13 = smov 32  }
  0x37   :  { %v2795_v5 = vld [vmem:[%s3297_s2 + $0x30] sm:$0xff]  ;;  %v2447_v6 = vpack.i.bf16 %v2790_v4, %v2785_v3  ;;  %v2234_v7 = vpack.c.bf16 %v2790_v4, %v2785_v3  ;;  %v2804_v8 = vld [vmem:[%s3297_s2 + $0x48] sm:$0xff]  ;;  %v2806_v9 = vld [vmem:[#allocation2] sm:$0xff]  ;;  %vm262_vm1 = vcmask 64512   ;;  %s2689_s14 = smov 112   ;;  %s2690_s15 = smov 120  }
  0x38   :  { %v2779_v1 = vshrl.u32 %v178_v0, 7  ;;  %v2238_v10 = vpack.c.bf16 %v2804_v8, %v2795_v5  ;;  %2045 = vmatprep.mubr.msk.f32.mxu0 %vm96_vm0, %v2806_v9  ;;  %v2812_v11 = vld [vmem:[#allocation7] sm:$0xff]  ;;  %v2818_v13 = vld [vmem:[#allocation2 + $0x8] sm:$0xff]  ;;  %s2691_s16 = smov 104   ;;  %s2692_s1 = smov 96   ;;  %vm2863_vm2 = vmpackc.low %vm262_vm1, %vm262_vm1  ;;  %vm400_vm3 = vcmask 523264  }
  0x39   :  { %2235 = vmatprep.subr.bf16.mxu0 %v2234_v7  ;;  %s2693_s17 = smov 64   ;;  %v2897_v62 = vld [vmem:[#allocation5 + $0x8] sm:$0xff]  ;;  %v2899_v63 = vld [vmem:[#allocation5] sm:$0xff]  ;;  %s2694_s18 = smov 24   ;;  %vm655_vm4 = vcmask 130048   ;;  %vm657_vm5 = vcmask 195584  }
  0x3a   :  { %v186_v2 = vsub.s32 1, %v2779_v1  ;;  %2237 = vmatpush3.bf16.msra.mxu0 %v2234_v7  ;;  %v180_v14 = vsub.s32 0, %v2779_v1  ;;  %v196_v33 = vsub.s32 2, %v2779_v1  ;;  %s2695_s19 = smov 16   ;;  %v1006_v38 = vsub.s32 6, %v2779_v1 }
  0x3b   :  { %2239 = vmatprep.subr.bf16.mxu0 %v2238_v10 }
  0x3c   :  { %v187_v12 = vrot.slane %v2812_v11, %v186_v2  ;;  %v181_v15 = vrot.slane %v2812_v11, %v180_v14  ;;  %v197_v34 = vrot.slane %v2812_v11, %v196_v33 }
  0x3e   :  { %189 = vrot.lane.b32.xlu0 %v187_v12, %s2688_s13  ;;  %2241 = vmatpush3.bf16.msra.mxu0 %v2238_v10 }
  0x41   :  { %2046 = vmatmul.mubr.msk.f32.vlgmr.msra.gmra.mrb[0].mxu0 %vm96_vm0, %v2818_v13 }
  0xb0   :  { %v190_v16 = vpop.permute.xlu0 %189 }
 0x114   :  { %v2826_v17 = vpop.f32.mrb[0].mxu0 }
 0x115   :  { %v2829_v18 = vadd.f32 %v2826_v17, %v181_v15  ;;  %v2831_v19 = vpop.f32.mrb[1].mxu0  ;;  %v193_v22 = vadd.f32 %v2826_v17, %v190_v16 }
 0x116   :  { %v182_v20 = vadd.f32 %v181_v15, %v2831_v19  ;;  %v192_v21 = vadd.f32 %v190_v16, %v2831_v19  ;;  %v2903_v15 = vld [vmem:[#allocation5 + $0x18] sm:$0xff] }
 0x118   :  { %221 = vrot.lane.b32.xlu1 %v192_v21, %s2689_s14  ;;  %219 = vrot.lane.b32.xlu0 %v192_v21, %s2690_s15 }
 0x119   :  { %2064 = vmatprep.mubr.msk.f32.mxu1 %vm262_vm1, %v182_v20 }
 0x11c   :  { %223 = vrot.lane.b32.xlu1 %v192_v21, %s2691_s16  ;;  %226 = vrot.lane.b32.xlu0 %v193_v22, %s2690_s15 }
 0x120   :  { %228 = vrot.lane.b32.xlu1 %v193_v22, %s2689_s14  ;;  %230 = vrot.lane.b32.xlu0 %v193_v22, %s2691_s16 }
 0x18a   :  { %v222_v23 = vpop.permute.xlu1 %221  ;;  %v220_v24 = vpop.permute.xlu0 %219 }
 0x18b   :  { %v2392_v25 = vpack.i.bf16 %v220_v24, %v192_v21  ;;  %v2908_v21 = vld [vmem:[#allocation5 + $0x10] sm:$0xff] }
 0x18d   :  { %2393 = vrot.lane.b32.xlu1 %v2392_v25, %s2692_s1 }
 0x18e   :  { %v224_v26 = vpop.permute.xlu1 %223  ;;  %v227_v27 = vpop.permute.xlu0 %226 }
 0x18f   :  { %v2397_v28 = vpack.i.bf16 %v224_v26, %v222_v23  ;;  %v2402_v29 = vpack.i.bf16 %v227_v27, %v193_v22  ;;  %v2910_v22 = vld [vmem:[#allocation5 + $0x20] sm:$0xff]  ;;  %v2914_v26 = vld [vmem:[#allocation5 + $0x28] sm:$0xff] }
 0x191   :  { %2398 = vrot.lane.b32.xlu0 %v2397_v28, %s2692_s1  ;;  %2403 = vrot.lane.b32.xlu1 %v2402_v29, %s2692_s1  ;;  %v2917_v29 = vld [vmem:[#allocation5 + $0x30] sm:$0xff] }
 0x192   :  { %v229_v30 = vpop.permute.xlu1 %228  ;;  %v231_v31 = vpop.permute.xlu0 %230 }
 0x193   :  { %v2407_v32 = vpack.i.bf16 %v231_v31, %v229_v30 }
 0x195   :  { %2408 = vrot.lane.b32.xlu0 %v2407_v32, %s2692_s1  ;;  %205 = vrot.lane.b32.xlu1 %v182_v20, %s2690_s15 }
 0x199   :  { %207 = vrot.lane.b32.xlu0 %v182_v20, %s2689_s14  ;;  %209 = vrot.lane.b32.xlu1 %v182_v20, %s2691_s16 }
 0x19d   :  { %212 = vrot.lane.b32.xlu0 %v2829_v18, %s2690_s15  ;;  %214 = vrot.lane.b32.xlu1 %v2829_v18, %s2689_s14 }
 0x1a1   :  { %216 = vrot.lane.b32.xlu0 %v2829_v18, %s2691_s16  ;;  %199 = vrot.lane.b32.xlu1 %v197_v34, %s2693_s17 }
 0x1ff   :  { %v2394_v35 = vpop.permute.xlu1 %2393 }
 0x200   :  { %v2396_v36 = vunpack.i.h.bf16 %v2394_v35  ;;  %v2395_v37 = vunpack.i.l.bf16 %v2394_v35  ;;  %v2922_v35 = vld [vmem:[#allocation5 + $0x38] sm:$0xff] }
 0x202   :  { %v2242_v39 = vpack.c.bf16 %v2396_v36, %v2395_v37 }
 0x203   :  { %v2404_v40 = vpop.permute.xlu1 %2403  ;;  %v2399_v41 = vpop.permute.xlu0 %2398 }
 0x204   :  { %v2401_v42 = vunpack.i.h.bf16 %v2399_v41  ;;  %v2400_v43 = vunpack.i.l.bf16 %v2399_v41  ;;  %2244 = vmatprep.subr.msk.bf16.mxu1 %vm2863_vm2, %v2242_v39  ;;  %v2406_v46 = vunpack.i.h.bf16 %v2404_v40  ;;  %v2405_v47 = vunpack.i.l.bf16 %v2404_v40 }
 0x205   :  { %2247 = vmatpush3.bf16.xpose.msk.msra.mxu1 %vm2863_vm2, %v2242_v39 }
 0x206   :  { %v2248_v44 = vpack.c.bf16 %v2401_v42, %v2400_v43  ;;  %v2254_v49 = vpack.c.bf16 %v2406_v46, %v2405_v47 }
 0x207   :  { %v206_v45 = vpop.permute.xlu1 %205  ;;  %v2409_v50 = vpop.permute.xlu0 %2408 }
 0x208   :  { %2250 = vmatprep.subr.msk.bf16.mxu1 %vm2863_vm2, %v2248_v44  ;;  %v2411_v52 = vunpack.i.h.bf16 %v2409_v50  ;;  %v2410_v53 = vunpack.i.l.bf16 %v2409_v50 }
 0x20a   :  { %v2260_v55 = vpack.c.bf16 %v2411_v52, %v2410_v53 }
 0x20b   :  { %v210_v48 = vpop.permute.xlu1 %209  ;;  %v208_v59 = vpop.permute.xlu0 %207 }
 0x20d   :  { %2253 = vmatpush3.bf16.xpose.msk.msra.mxu1 %vm2863_vm2, %v2248_v44 }
 0x20e   :  { %2256 = vmatprep.subr.msk.bf16.mxu1 %vm2863_vm2, %v2254_v49 }
 0x20f   :  { %v215_v51 = vpop.permute.xlu1 %214  ;;  %v213_v60 = vpop.permute.xlu0 %212 }
 0x213   :  { %v200_v54 = vpop.permute.xlu1 %199  ;;  %v217_v61 = vpop.permute.xlu0 %216 }
 0x214   :  { %v202_v56 = vadd.f32 %v200_v54, %v2831_v19  ;;  %v2879_v57 = vadd.f32 %v2826_v17, %v200_v54 }
 0x215   :  { %2259 = vmatpush3.bf16.xpose.msk.msra.mxu1 %vm2863_vm2, %v2254_v49 }
 0x216   :  { %2262 = vmatprep.subr.msk.bf16.mxu1 %vm2863_vm2, %v2260_v55  ;;  %v2412_v58 = vpack.i.bf16 %v2879_v57, %v202_v56 }
 0x218   :  { %2413 = vrot.lane.b32.xlu1 %v2412_v58, %s2690_s15 }
 0x21d   :  { %2265 = vmatpush3.bf16.xpose.msk.msra.mxu1 %vm2863_vm2, %v2260_v55 }
 0x224   :  { %2065 = vmatmul.mubr.msk.f32.vlgmr.msra.gmra.mrb[0].mxu1 %vm262_vm1, %v206_v45 }
 0x225   :  { %2067 = vmatprep.mubr.msk.f32.mxu1 %vm262_vm1, %v208_v59 }
 0x228   :  { %2068 = vmatmul.mubr.msk.f32.gmra.mrb[2].mxu1 %vm262_vm1, %v210_v48 }
 0x229   :  { %2070 = vmatprep.mubr.msk.f32.mxu1 %vm262_vm1, %v2829_v18 }
 0x22c   :  { %2071 = vmatmul.mubr.msk.f32.gmra.mrb[4].mxu1 %vm262_vm1, %v213_v60 }
 0x22d   :  { %2073 = vmatprep.mubr.msk.f32.mxu1 %vm262_vm1, %v215_v51 }
 0x230   :  { %2074 = vmatmul.mubr.msk.f32.gmra.mrb[6].mxu1 %vm262_vm1, %v217_v61 }
 0x28a   :  { %v2930_v43 = vpop.permute.xlu1 %2413 }
 0x28b   :  { %v2415_v44 = vunpack.i.l.bf16 %v2930_v43 }
 0x28d   :  { %v2427_v45 = vpack.i.bf16 %v2415_v44, %v202_v56 }
 0x2f7   :  { %v2066_v0 = vpop.f32.mrb[0].mxu1 }
 0x2f8   :  { %v367_v7 = vadd.f32 %v2066_v0, %v2897_v62  ;;  %v361_v10 = vpop.f32.mrb[1].mxu1 }
 0x2f9   :  { %v362_v12 = vadd.f32 %v361_v10, %v2899_v63 }
 0x2fa   :  { %v404_v16 = vsel %vm400_vm3, %v367_v7, -inf }
 0x2fb   :  { %405 = vmax.xlane.f32.xlu1 %v404_v16  ;;  %v2069_v17 = vpop.f32.mrb[2].mxu1  ;;  %v401_v18 = vsel %vm400_vm3, %v362_v12, -inf }
 0x2fc   :  { %v377_v19 = vadd.f32 %v2069_v17, %v2903_v15  ;;  %v371_v20 = vpop.f32.mrb[3].mxu1  ;;  %402 = vmax.xlane.f32.xlu0 %v401_v18 }
 0x2fd   :  { %v372_v24 = vadd.f32 %v371_v20, %v2908_v21 }
 0x2fe   :  { %v410_v23 = vsel %vm400_vm3, %v377_v19, -inf }
 0x2ff   :  { %v2072_v25 = vpop.f32.mrb[4].mxu1  ;;  %v407_v34 = vsel %vm400_vm3, %v372_v24, -inf }
 0x300   :  { %v381_v27 = vpop.f32.mrb[5].mxu1  ;;  %411 = vmax.xlane.f32.xlu0 %v410_v23  ;;  %v387_v30 = vadd.f32 %v2072_v25, %v2914_v26 }
 0x301   :  { %v382_v28 = vadd.f32 %v381_v27, %v2910_v22 }
 0x302   :  { %v416_v41 = vsel %vm400_vm3, %v387_v30, -inf }
 0x303   :  { %v2075_v31 = vpop.f32.mrb[6].mxu1  ;;  %v413_v32 = vsel %vm400_vm3, %v382_v28, -inf }
 0x304   :  { %v391_v36 = vpop.f32.mrb[7].mxu1  ;;  %414 = vmax.xlane.f32.xlu1 %v413_v32  ;;  %408 = vmax.xlane.f32.xlu0 %v407_v34  ;;  %v397_v39 = vadd.f32 %v2075_v31, %v2922_v35 }
 0x305   :  { %v392_v37 = vadd.f32 %v391_v36, %v2917_v29 }
 0x306   :  { %v422_v42 = vsel %vm400_vm3, %v397_v39, -inf }
 0x307   :  { %v419_v40 = vsel %vm400_vm3, %v392_v37, -inf }
 0x308   :  { %420 = vmax.xlane.f32.xlu1 %v419_v40  ;;  %417 = vmax.xlane.f32.xlu0 %v416_v41 }
 0x30c   :  { %423 = vmax.xlane.f32.xlu0 %v422_v42 }
 0x319   :  { %2423 = vrot.lane.b32.xlu1 %v2412_v58, %s2691_s16 }
 0x322   :  { %2418 = vrot.lane.b32.xlu0 %v2412_v58, %s2689_s14 }
 0x326   :  { %2428 = vrot.lane.b32.xlu0 %v2427_v45, %s2693_s17 }
 0x388   :  { %v406_v46 = vpop.xlane.xlu1 %405 }
 0x389   :  { %v426_v47 = vsub.f32 %v367_v7, %v406_v46  ;;  %v403_v48 = vpop.xlane.xlu0 %402 }
 0x38a   :  { %v425_v49 = vsub.f32 %v362_v12, %v403_v48 }
 0x38b   :  { %v435_v50 = vmul.f32 1.442695, %v426_v47 }
 0x38c   :  { %v433_v51 = vmul.f32 1.442695, %v425_v49 }
 0x38d   :  { %2512 = vpow2.f32 %v435_v50  ;;  %v412_v52 = vpop.xlane.xlu0 %411  ;;  %v2416_v50 = vunpack.i.h.bf16 %v2930_v43 }
 0x38e   :  { %2514 = vpow2.f32 %v433_v51  ;;  %v428_v53 = vsub.f32 %v377_v19, %v412_v52 }
 0x390   :  { %v439_v54 = vmul.f32 1.442695, %v428_v53  ;;  %v2437_v53 = vpack.i.bf16 %v2416_v50, %v2879_v57 }
 0x391   :  { %v415_v55 = vpop.xlane.xlu1 %414  ;;  %v409_v59 = vpop.xlane.xlu0 %408 }
 0x392   :  { %2516 = vpow2.f32 %v439_v54  ;;  %v429_v60 = vsub.f32 %v382_v28, %v415_v55  ;;  %v427_v61 = vsub.f32 %v372_v24, %v409_v59 }
 0x394   :  { %v437_v58 = vmul.f32 1.442695, %v427_v61  ;;  %v441_v56 = vmul.f32 1.442695, %v429_v60 }
 0x395   :  { %v418_v0 = vpop.xlane.xlu0 %417  ;;  %v421_v10 = vpop.xlane.xlu1 %420 }
 0x396   :  { %v430_v16 = vsub.f32 %v387_v30, %v418_v0  ;;  %2518 = vpow2.f32 %v437_v58  ;;  %v431_v19 = vsub.f32 %v392_v37, %v421_v10 }
 0x397   :  { %v2935_v7 = vpop.eup %2512  ;;  %2520 = vpow2.f32 %v441_v56 }
 0x398   :  { %v2515_v12 = vpop.eup %2514  ;;  %v443_v17 = vmul.f32 1.442695, %v430_v16  ;;  %v452_v18 = vsel %vm400_vm3, %v2935_v7, 0.0  ;;  %v445_v28 = vmul.f32 1.442695, %v431_v19 }
 0x399   :  { %453 = vadd.xlane.f32.xlu0 %v452_v18  ;;  %v424_v20 = vpop.xlane.xlu0 %423  ;;  %v449_v23 = vsel %vm400_vm3, %v2515_v12, 0.0  ;;  %v2424_v51 = vpop.permute.xlu1 %2423 }
 0x39a   :  { %v432_v24 = vsub.f32 %v397_v39, %v424_v20  ;;  %450 = vadd.xlane.f32.xlu1 %v449_v23  ;;  %2522 = vpow2.f32 %v443_v17  ;;  %v2425_v55 = vunpack.i.l.bf16 %v2424_v51  ;;  %v2426_v59 = vunpack.i.h.bf16 %v2424_v51 }
 0x39c   :  { %v2940_v25 = vpop.eup %2516  ;;  %v447_v27 = vmul.f32 1.442695, %v432_v24 }
 0x39d   :  { %v2419_v30 = vpop.permute.xlu0 %2418  ;;  %v458_v31 = vsel %vm400_vm3, %v2940_v25, 0.0 }
 0x39e   :  { %2524 = vpow2.f32 %v447_v27  ;;  %459 = vadd.xlane.f32.xlu1 %v458_v31  ;;  %v2420_v52 = vunpack.i.l.bf16 %v2419_v30  ;;  %v2421_v54 = vunpack.i.h.bf16 %v2419_v30 }
 0x39f   :  { %2526 = vpow2.f32 %v445_v28 }
 0x3a0   :  { %v2944_v32 = vpop.eup %2518  ;;  %v2432_v60 = vpack.i.bf16 %v2425_v55, %v2420_v52  ;;  %v2442_v61 = vpack.i.bf16 %v2426_v59, %v2421_v54 }
 0x3a1   :  { %v2429_v34 = vpop.permute.xlu0 %2428  ;;  %v455_v39 = vsel %vm400_vm3, %v2944_v32, 0.0  ;;  %v2948_v40 = vpop.eup %2520 }
 0x3a2   :  { %v2431_v36 = vunpack.i.h.bf16 %v2429_v34  ;;  %v2430_v37 = vunpack.i.l.bf16 %v2429_v34  ;;  %456 = vadd.xlane.f32.xlu0 %v455_v39  ;;  %v461_v44 = vsel %vm400_vm3, %v2948_v40, 0.0 }
 0x3a4   :  { %v2266_v41 = vpack.c.bf16 %v2431_v36, %v2430_v37  ;;  %v2950_v42 = vpop.eup %2522 }
 0x3a5   :  { %v464_v45 = vsel %vm400_vm3, %v2950_v42, 0.0 }
 0x3a6   :  { %2267 = vmatprep.subr.bf16.mxu0 %v2266_v41  ;;  %462 = vadd.xlane.f32.xlu0 %v461_v44 }
 0x3a7   :  { %465 = vadd.xlane.f32.xlu1 %v464_v45  ;;  %2269 = vmatpush3.bf16.msra.mxu0 %v2266_v41 }
 0x3a8   :  { %v2956_v46 = vpop.eup %2524 }
 0x3a9   :  { %v470_v47 = vsel %vm400_vm3, %v2956_v46, 0.0  ;;  %v2960_v48 = vpop.eup %2526 }
 0x3aa   :  { %v467_v49 = vsel %vm400_vm3, %v2960_v48, 0.0 }
 0x3ab   :  { %471 = vadd.xlane.f32.xlu1 %v470_v47 }
 0x3af   :  { %468 = vadd.xlane.f32.xlu1 %v467_v49 }
 0x3bc   :  { %2438 = vrot.lane.b32.xlu0 %v2437_v53, %s2693_s17 }
 0x3c0   :  { %2433 = vrot.lane.b32.xlu1 %v2432_v60, %s2693_s17  ;;  %2443 = vrot.lane.b32.xlu0 %v2442_v61, %s2693_s17 }
 0x3c4   :  { %2448 = vrot.lane.b32.xlu1 %v2447_v6, %s2688_s13 }
 0x426   :  { %v454_v58 = vpop.xlane.xlu0 %453 }
 0x427   :  { %v451_v43 = vpop.xlane.xlu1 %450 }
 0x428   :  { %2528 = vrcp.f32 %v451_v43 }
 0x429   :  { %2530 = vrcp.f32 %v454_v58 }
 0x42b   :  { %v460_v57 = vpop.xlane.xlu1 %459 }
 0x42f   :  { %v457_v56 = vpop.xlane.xlu0 %456 }
 0x430   :  { %2532 = vrcp.f32 %v457_v56 }
 0x431   :  { %2534 = vrcp.f32 %v460_v57 }
 0x432   :  { %v2529_v0 = vpop.eup %2528 }
 0x433   :  { %v474_v10 = vmul.f32 %v2529_v0, %v2515_v12  ;;  %v463_v17 = vpop.xlane.xlu0 %462  ;;  %v2531_v36 = vpop.eup %2530 }
 0x434   :  { %v466_v16 = vpop.xlane.xlu1 %465  ;;  %2536 = vrcp.f32 %v463_v17  ;;  %v476_v39 = vmul.f32 %v2531_v36, %v2935_v7 }
 0x435   :  { %2092 = vmatprep.mubr.msk.f32.mxu0 %vm400_vm3, %v474_v10  ;;  %2538 = vrcp.f32 %v466_v16 }
 0x437   :  { %v2439_v19 = vpop.permute.xlu0 %2438 }
 0x438   :  { %v472_v18 = vpop.xlane.xlu1 %471  ;;  %v2441_v24 = vunpack.i.h.bf16 %v2439_v19  ;;  %v2440_v27 = vunpack.i.l.bf16 %v2439_v19 }
 0x43a   :  { %v2274_v30 = vpack.c.bf16 %v2441_v24, %v2440_v27  ;;  %v2533_v37 = vpop.eup %2532 }
 0x43b   :  { %v2444_v4 = vpop.permute.xlu0 %2443  ;;  %v2535_v41 = vpop.eup %2534  ;;  %v478_v44 = vmul.f32 %v2533_v37, %v2944_v32 }
 0x43c   :  { %v469_v20 = vpop.xlane.xlu1 %468  ;;  %v2446_v31 = vunpack.i.h.bf16 %v2444_v4  ;;  %v2445_v34 = vunpack.i.l.bf16 %v2444_v4  ;;  %v480_v47 = vmul.f32 %v2535_v41, %v2940_v25  ;;  %v2452_v25 = vpack.i.bf16 %v2804_v8, %v2795_v5  ;;  %v73_v41 = vld [vmem:[%s3297_s2 + $0x38] sm:$0xff] }
 0x43d   :  { %2540 = vrcp.f32 %v469_v20 }
 0x43e   :  { %v2278_v12 = vpack.c.bf16 %v2446_v31, %v2445_v34  ;;  %2542 = vrcp.f32 %v472_v18  ;;  %v2537_v45 = vpop.eup %2536  ;;  %2453 = vrot.lane.b32.xlu0 %v2452_v25, %s2688_s13 }
 0x43f   :  { %v2539_v49 = vpop.eup %2538  ;;  %v482_v50 = vmul.f32 %v2537_v45, %v2948_v40 }
 0x440   :  { %v2434_v23 = vpop.permute.xlu1 %2433  ;;  %v484_v7 = vmul.f32 %v2539_v49, %v2950_v42  ;;  %v70_v49 = vld [vmem:[%s3297_s2 + $0x20] sm:$0xff] }
 0x441   :  { %v2436_v28 = vunpack.i.h.bf16 %v2434_v23  ;;  %v2435_v3 = vunpack.i.l.bf16 %v2434_v23 }
 0x443   :  { %v2270_v6 = vpack.c.bf16 %v2436_v28, %v2435_v3 }
 0x444   :  { %v2449_v40 = vpop.permute.xlu1 %2448 }
 0x445   :  { %2271 = vmatprep.subr.bf16.mxu0 %v2270_v6  ;;  %v2451_v54 = vunpack.i.h.bf16 %v2449_v40  ;;  %v2450_v55 = vunpack.i.l.bf16 %v2449_v40 }
 0x446   :  { %2273 = vmatpush3.bf16.msra.mxu0 %v2270_v6  ;;  %v676_v6 = vsub.s32 3, %v2779_v1 }
 0x447   :  { %2275 = vmatprep.subr.bf16.mxu0 %v2274_v30  ;;  %v2541_v51 = vpop.eup %2540  ;;  %v2282_v42 = vpack.c.bf16 %v2451_v54, %v2450_v55 }
 0x448   :  { %v2543_v52 = vpop.eup %2542  ;;  %v486_v32 = vmul.f32 %v2541_v51, %v2960_v48  ;;  %v64_v51 = vld [vmem:[#allocation2 + $0x10] sm:$0xff] }
 0x449   :  { %v488_v53 = vmul.f32 %v2543_v52, %v2956_v46  ;;  %2134 = vmatprep.mubr.msk.f32.mxu1 %vm96_vm0, %v64_v51 }
 0x44a   :  { %2277 = vmatpush3.bf16.msra.mxu0 %v2274_v30  ;;  %v677_v30 = vrot.slane %v2812_v11, %v676_v6 }
 0x44b   :  { %2279 = vmatprep.subr.bf16.mxu0 %v2278_v12 }
 0x44e   :  { %2281 = vmatpush3.bf16.msra.mxu0 %v2278_v12 }
 0x44f   :  { %2283 = vmatprep.subr.bf16.mxu0 %v2282_v42 }
 0x451   :  { %2093 = vmatmul.mubr.msk.f32.vlgmr.msra.gmra.mrb[2].mxu0 %vm400_vm3, %v476_v39 }
 0x452   :  { %2095 = vmatprep.mubr.msk.f32.mxu0 %vm400_vm3, %v478_v44  ;;  %2285 = vmatpush3.bf16.msra.mxu0 %v2282_v42  ;;  %v76_v44 = vld [vmem:[%s3297_s2 + $0x50] sm:$0xff] }
 0x453   :  { %v3015_v45 = vpack.i.bf16 %v76_v44, %v73_v41 }
 0x455   :  { %2096 = vmatmul.mubr.msk.f32.gmra.mrb[4].mxu0 %vm400_vm3, %v480_v47  ;;  %v67_v47 = vld [vmem:[%s3297_s2 + $0x8] sm:$0xff] }
 0x456   :  { %2098 = vmatprep.mubr.msk.f32.mxu0 %vm400_vm3, %v482_v50  ;;  %v3023_v50 = vpack.i.bf16 %v70_v49, %v67_v47 }
 0x459   :  { %2099 = vmatmul.mubr.msk.f32.gmra.mrb[6].mxu0 %vm400_vm3, %v484_v7 }
 0x45a   :  { %2101 = vmatprep.mubr.msk.f32.mxu0 %vm400_vm3, %v486_v32 }
 0x45d   :  { %2102 = vmatmul.mubr.msk.f32.gmra.mrb[8].mxu0 %vm400_vm3, %v488_v53 }
 0x4b0   :  { %v2454_v48 = vpop.permute.xlu0 %2453 }
 0x4b1   :  { %v2456_v59 = vunpack.i.h.bf16 %v2454_v48  ;;  %v2455_v60 = vunpack.i.l.bf16 %v2454_v48 }
 0x4b3   :  { %v2286_v61 = vpack.c.bf16 %v2456_v59, %v2455_v60 }
 0x4b5   :  { %2287 = vmatprep.subr.bf16.mxu0 %v2286_v61 }
 0x4b6   :  { %2289 = vmatpush3.bf16.msra.mxu0 %v2286_v61 }
 0x524   :  { %v2094_v46 = vpop.f32.mrb[2].mxu0 }
 0x525   :  { %643 = vrot.lane.b32.xlu1 %v2094_v46, %s2686_s6  ;;  %v603_v43 = vpop.f32.mrb[3].mxu0 }
 0x528   :  { %v2097_v58 = vpop.f32.mrb[4].mxu0 }
 0x529   :  { %651 = vrot.lane.b32.xlu0 %v2097_v58, %s2694_s18  ;;  %v613_v5 = vpop.f32.mrb[5].mxu0 }
 0x52c   :  { %v2100_v8 = vpop.f32.mrb[6].mxu0 }
 0x52d   :  { %647 = vrot.lane.b32.xlu0 %v613_v5, %s2695_s19  ;;  %660 = vrot.lane.b32.xlu1 %v2100_v8, %s2686_s6  ;;  %v623_v57 = vpop.f32.mrb[7].mxu0 }
 0x530   :  { %v2103_v56 = vpop.f32.mrb[8].mxu0 }
 0x531   :  { %668 = vrot.lane.b32.xlu0 %v2103_v56, %s2694_s18  ;;  %v633_v0 = vpop.f32.mrb[9].mxu0  ;;  %v2290_v56 = vpack.c.bf16 %v70_v49, %v67_v47 }
 0x532   :  { %664 = vrot.lane.b32.xlu1 %v633_v0, %s2695_s19  ;;  %v2294_v0 = vpack.c.bf16 %v76_v44, %v73_v41 }
 0x533   :  { %2291 = vmatprep.subr.bf16.mxu0 %v2290_v56 }
 0x597   :  { %v644_v10 = vpop.permute.xlu1 %643 }
 0x598   :  { %v654_v17 = vsel %vm262_vm1, %v603_v43, %v644_v10 }
 0x59b   :  { %v652_v16 = vpop.permute.xlu0 %651 }
 0x59f   :  { %v648_v18 = vpop.permute.xlu0 %647  ;;  %v661_v19 = vpop.permute.xlu1 %660 }
 0x5a0   :  { %v656_v20 = vsel %vm655_vm4, %v654_v17, %v648_v18  ;;  %v671_v24 = vsel %vm262_vm1, %v623_v57, %v661_v19  ;;  %v65_v57 = vld [vmem:[#allocation2 + $0x18] sm:$0xff] }
 0x5a1   :  { %v658_v23 = vsel %vm657_vm5, %v656_v20, %v652_v16 }
 0x5a2   :  { %2112 = vmatprep.mubr.msk.f32.mxu0 %vm96_vm0, %v658_v23  ;;  %v3033_v23 = vld [vmem:[#allocation7 + $0x8] sm:$0xff] }
 0x5a3   :  { %v669_v28 = vpop.permute.xlu0 %668 }
 0x5a4   :  { %v665_v27 = vpop.permute.xlu1 %664 }
 0x5a5   :  { %v672_v3 = vsel %vm655_vm4, %v671_v24, %v665_v27  ;;  %v799_v24 = vrot.slane %v3033_v23, %v196_v33  ;;  %v811_v27 = vrot.slane %v3033_v23, %v676_v6  ;;  %v1000_v33 = vsub.s32 5, %v2779_v1 }
 0x5a6   :  { %v673_v4 = vsel %vm657_vm5, %v672_v3, %v669_v28 }
 0x5a7   :  { %2113 = vmatmul.mubr.msk.f32.vlgmr.msra.gmra.mrb[10].mxu0 %vm96_vm0, %v673_v4  ;;  %v1001_v6 = vrot.slane %v2812_v11, %v1000_v33 }
 0x5a8   :  { %2293 = vmatpush3.bf16.msra.mxu0 %v2290_v56 }
 0x5a9   :  { %2295 = vmatprep.subr.bf16.mxu0 %v2294_v0 }
 0x5ac   :  { %2297 = vmatpush3.bf16.msra.mxu0 %v2294_v0 }
 0x67a   :  { %v2114_v31 = vpop.f32.mrb[10].mxu0 }
 0x67b   :  { %v772_v34 = vadd.f32 %v2114_v31, %v677_v30  ;;  %v766_v12 = vpop.f32.mrb[11].mxu0 }
 0x67c   :  { %v767_v36 = vadd.f32 %v766_v12, %v677_v30 }
 0x67d   :  { %v778_v37 = vsel %vm96_vm0, %v772_v34, 0.0 }
 0x67e   :  { %779 = vadd.xlane.f32.xlu0 %v778_v37  ;;  %v775_v39 = vsel %vm96_vm0, %v767_v36, 0.0 }
 0x67f   :  { %776 = vadd.xlane.f32.xlu1 %v775_v39 }
 0x690   :  { %2463 = vrot.lane.b32.xlu1 %v3015_v45, %s2692_s1 }
 0x694   :  { %2458 = vrot.lane.b32.xlu0 %v3023_v50, %s2692_s1 }
 0x70b   :  { %v780_v7 = vpop.xlane.xlu0 %779 }
 0x70c   :  { %v783_v52 = vmul.f32 0.03125, %v780_v7  ;;  %v777_v32 = vpop.xlane.xlu1 %776 }
 0x70d   :  { %v782_v53 = vmul.f32 0.03125, %v777_v32 }
 0x70e   :  { %v785_v25 = vsub.f32 %v772_v34, %v783_v52 }
 0x70f   :  { %v784_v40 = vsub.f32 %v767_v36, %v782_v53  ;;  %v2459_v54 = vpop.permute.xlu0 %2458 }
 0x710   :  { %v2461_v55 = vunpack.i.h.bf16 %v2459_v54  ;;  %v2460_v42 = vunpack.i.l.bf16 %v2459_v54  ;;  %v787_v48 = vmul.f32 %v785_v25, %v785_v25  ;;  %v2464_v59 = vpop.permute.xlu1 %2463  ;;  %v801_v28 = vmul.f32 %v799_v24, %v785_v25 }
 0x711   :  { %v2466_v60 = vunpack.i.h.bf16 %v2464_v59  ;;  %v2465_v61 = vunpack.i.l.bf16 %v2464_v59  ;;  %v786_v46 = vmul.f32 %v784_v40, %v784_v40  ;;  %v800_v4 = vmul.f32 %v799_v24, %v784_v40 }
 0x712   :  { %v2298_v43 = vpack.c.bf16 %v2461_v55, %v2460_v42  ;;  %v791_v58 = vsel %vm96_vm0, %v787_v48, 0.0  ;;  %v818_v55 = vsub.s32 4, %v2779_v1 }
 0x713   :  { %792 = vadd.xlane.f32.xlu0 %v791_v58  ;;  %v2302_v5 = vpack.c.bf16 %v2466_v60, %v2465_v61  ;;  %v788_v8 = vsel %vm96_vm0, %v786_v46, 0.0 }
 0x714   :  { %2299 = vmatprep.subr.bf16.mxu1 %v2298_v43  ;;  %789 = vadd.xlane.f32.xlu1 %v788_v8  ;;  %v819_v42 = vrot.slane %v2812_v11, %v818_v55 }
 0x715   :  { %2301 = vmatpush3.bf16.msra.mxu1 %v2298_v43 }
 0x716   :  { %2303 = vmatprep.subr.bf16.mxu1 %v2302_v5 }
 0x719   :  { %2305 = vmatpush3.bf16.msra.mxu1 %v2302_v5 }
 0x71c   :  { %2135 = vmatmul.mubr.msk.f32.vlgmr.msra.gmra.mrb[8].mxu1 %vm96_vm0, %v65_v57 }
 0x7a0   :  { %v793_v10 = vpop.xlane.xlu0 %792 }
 0x7a1   :  { %v795_v16 = vmul.f32 0.03125, %v793_v10  ;;  %v790_v17 = vpop.xlane.xlu1 %789 }
 0x7a2   :  { %v794_v18 = vmul.f32 0.03125, %v790_v17 }
 0x7a3   :  { %v803_v19 = vadd.f32 1e-06, %v795_v16 }
 0x7a4   :  { %v802_v20 = vadd.f32 1e-06, %v794_v18 }
 0x7a5   :  { %2544 = vrsqrt.f32 %v803_v19 }
 0x7a6   :  { %2546 = vrsqrt.f32 %v802_v20 }
 0x7af   :  { %v2545_v3 = vpop.eup %2544 }
 0x7b0   :  { %v2547_v30 = vpop.eup %2546  ;;  %v807_v31 = vmul.f32 %v2545_v3, %v801_v28 }
 0x7b1   :  { %v806_v34 = vmul.f32 %v2547_v30, %v800_v4 }
 0x7b2   :  { %v813_v12 = vadd.f32 %v811_v27, %v807_v31 }
 0x7b3   :  { %v812_v36 = vadd.f32 %v811_v27, %v806_v34 }
 0x7b4   :  { %v3043_v39 = vadd.f32 %v813_v12, %v2818_v13 }
 0x7b5   :  { %v3040_v37 = vadd.f32 %v812_v36, %v2806_v9 }
 0x7b7   :  { %2123 = vmatprep.mubr.msk.f32.mxu0 %vm96_vm0, %v3040_v37 }
 0x7b8   :  { %2124 = vmatmul.mubr.msk.f32.vlgmr.msra.gmra.mrb[12].mxu0 %vm96_vm0, %v3043_v39 }
 0x7ef   :  { %v3053_v41 = vpop.f32.mrb[8].mxu1 }
 0x7f0   :  { %v3055_v44 = vpop.f32.mrb[9].mxu1  ;;  %v1003_v13 = vadd.f32 %v3053_v41, %v1001_v6 }
 0x7f1   :  { %v1002_v9 = vadd.f32 %v1001_v6, %v3055_v44 }
 0x7f3   :  { %1029 = vrot.lane.b32.xlu0 %v1002_v9, %s2690_s15  ;;  %1031 = vrot.lane.b32.xlu1 %v1002_v9, %s2689_s14 }
 0x7f7   :  { %1036 = vrot.lane.b32.xlu0 %v1003_v13, %s2690_s15  ;;  %1033 = vrot.lane.b32.xlu1 %v1002_v9, %s2691_s16 }
 0x7fb   :  { %1038 = vrot.lane.b32.xlu1 %v1003_v13, %s2689_s14  ;;  %1040 = vrot.lane.b32.xlu0 %v1003_v13, %s2691_s16 }
 0x865   :  { %v1030_v47 = vpop.permute.xlu0 %1029  ;;  %v1032_v49 = vpop.permute.xlu1 %1031 }
 0x866   :  { %v2306_v51 = vpack.c.bf16 %v1030_v47, %v1002_v9 }
 0x868   :  { %2308 = vmatprep.subr.msk.bf16.mxu0 %vm2863_vm2, %v2306_v51 }
 0x869   :  { %2311 = vmatpush3.bf16.xpose.msk.msra.mxu0 %vm2863_vm2, %v2306_v51  ;;  %v1034_v7 = vpop.permute.xlu1 %1033  ;;  %v1037_v32 = vpop.permute.xlu0 %1036 }
 0x86a   :  { %v2312_v52 = vpack.c.bf16 %v1034_v7, %v1032_v49  ;;  %v2318_v53 = vpack.c.bf16 %v1037_v32, %v1003_v13 }
 0x86c   :  { %2314 = vmatprep.subr.msk.bf16.mxu0 %vm2863_vm2, %v2312_v52 }
 0x86d   :  { %v1039_v25 = vpop.permute.xlu1 %1038  ;;  %v1041_v40 = vpop.permute.xlu0 %1040 }
 0x86e   :  { %v2324_v54 = vpack.c.bf16 %v1041_v40, %v1039_v25 }
 0x871   :  { %2317 = vmatpush3.bf16.xpose.msk.msra.mxu0 %vm2863_vm2, %v2312_v52 }
 0x872   :  { %2320 = vmatprep.subr.msk.bf16.mxu0 %vm2863_vm2, %v2318_v53 }
 0x879   :  { %2323 = vmatpush3.bf16.xpose.msk.msra.mxu0 %vm2863_vm2, %v2318_v53 }
 0x87a   :  { %2326 = vmatprep.subr.msk.bf16.mxu0 %vm2863_vm2, %v2324_v54 }
 0x881   :  { %2329 = vmatpush3.bf16.xpose.msk.msra.mxu0 %vm2863_vm2, %v2324_v54 }
 0x88b   :  { %v2125_v48 = vpop.f32.mrb[12].mxu0 }
 0x88c   :  { %v892_v59 = vpop.f32.mrb[13].mxu0  ;;  %v898_v61 = vadd.f32 %v2125_v48, %v819_v42 }
 0x88d   :  { %v893_v60 = vadd.f32 %v892_v59, %v819_v42 }
 0x88f   :  { %2153 = vmatprep.mubr.msk.f32.mxu0 %vm262_vm1, %v893_v60  ;;  %1015 = vrot.lane.b32.xlu1 %v893_v60, %s2690_s15 }
 0x890   :  { %1017 = vrot.lane.b32.xlu0 %v893_v60, %s2689_s14 }
 0x893   :  { %1019 = vrot.lane.b32.xlu1 %v893_v60, %s2691_s16 }
 0x894   :  { %1022 = vrot.lane.b32.xlu0 %v898_v61, %s2690_s15 }
 0x897   :  { %1024 = vrot.lane.b32.xlu1 %v898_v61, %s2689_s14 }
 0x898   :  { %1026 = vrot.lane.b32.xlu0 %v898_v61, %s2691_s16 }
 0x89b   :  { %1064 = vrot.lane.b32.xlu1 %v2899_v63, %s2693_s17 }
 0x89c   :  { %1066 = vrot.lane.b32.xlu0 %v2897_v62, %s2693_s17  ;;  %v1007_v62 = vrot.slane %v2812_v11, %v1006_v38 }
 0x89f   :  { %1068 = vrot.lane.b32.xlu1 %v2908_v21, %s2693_s17 }
 0x8a0   :  { %1070 = vrot.lane.b32.xlu0 %v2903_v15, %s2693_s17 }
 0x8a3   :  { %1072 = vrot.lane.b32.xlu1 %v2910_v22, %s2693_s17 }
 0x8a4   :  { %1074 = vrot.lane.b32.xlu0 %v2914_v26, %s2693_s17 }
 0x8a7   :  { %1076 = vrot.lane.b32.xlu1 %v2917_v29, %s2693_s17 }
 0x8a8   :  { %1078 = vrot.lane.b32.xlu0 %v2922_v35, %s2693_s17 }
 0x8ab   :  { %1009 = vrot.lane.b32.xlu1 %v1007_v62, %s2688_s13 }
 0x901   :  { %v1016_v63 = vpop.permute.xlu1 %1015 }
 0x902   :  { %v1018_v15 = vpop.permute.xlu0 %1017  ;;  %2154 = vmatmul.mubr.msk.f32.vlgmr.msra.gmra.mrb[14].mxu0 %vm262_vm1, %v1016_v63 }
 0x903   :  { %2156 = vmatprep.mubr.msk.f32.mxu0 %vm262_vm1, %v1018_v15 }
 0x905   :  { %v1020_v21 = vpop.permute.xlu1 %1019 }
 0x906   :  { %2157 = vmatmul.mubr.msk.f32.gmra.mrb[16].mxu0 %vm262_vm1, %v1020_v21  ;;  %v1023_v22 = vpop.permute.xlu0 %1022 }
 0x907   :  { %2159 = vmatprep.mubr.msk.f32.mxu0 %vm262_vm1, %v898_v61 }
 0x909   :  { %v1025_v26 = vpop.permute.xlu1 %1024 }
 0x90a   :  { %2160 = vmatmul.mubr.msk.f32.gmra.mrb[18].mxu0 %vm262_vm1, %v1023_v22  ;;  %v1027_v11 = vpop.permute.xlu0 %1026 }
 0x90b   :  { %2162 = vmatprep.mubr.msk.f32.mxu0 %vm262_vm1, %v1025_v26 }
 0x90d   :  { %v1065_v29 = vpop.permute.xlu1 %1064 }
 0x90e   :  { %2163 = vmatmul.mubr.msk.f32.gmra.mrb[20].mxu0 %vm262_vm1, %v1027_v11  ;;  %v1067_v56 = vpop.permute.xlu0 %1066 }
 0x911   :  { %v1069_v35 = vpop.permute.xlu1 %1068 }
 0x912   :  { %v1071_v17 = vpop.permute.xlu0 %1070 }
 0x915   :  { %v1073_v46 = vpop.permute.xlu1 %1072 }
 0x916   :  { %v1075_v3 = vpop.permute.xlu0 %1074 }
 0x919   :  { %v1077_v43 = vpop.permute.xlu1 %1076 }
 0x91a   :  { %v1079_v9 = vpop.permute.xlu0 %1078 }
 0x91d   :  { %v1010_v58 = vpop.permute.xlu1 %1009 }
 0x91e   :  { %v1012_v5 = vadd.f32 %v1010_v58, %v3055_v44  ;;  %v3122_v8 = vadd.f32 %v3053_v41, %v1010_v58 }
 0x920   :  { %v2467_v57 = vpack.i.bf16 %v3122_v8, %v1012_v5 }
 0x922   :  { %2468 = vrot.lane.b32.xlu1 %v2467_v57, %s2690_s15 }
 0x994   :  { %v3135_v32 = vpop.permute.xlu1 %2468 }
 0x995   :  { %v2470_v53 = vunpack.i.l.bf16 %v3135_v32 }
 0x997   :  { %v2482_v25 = vpack.i.bf16 %v2470_v53, %v1012_v5 }
 0x9d5   :  { %v2155_v0 = vpop.f32.mrb[14].mxu0 }
 0x9d6   :  { %v1192_v10 = vadd.f32 %v2155_v0, %v1067_v56  ;;  %v1186_v16 = vpop.f32.mrb[15].mxu0 }
 0x9d7   :  { %v1187_v18 = vadd.f32 %v1186_v16, %v1065_v29 }
 0x9d8   :  { %v1228_v19 = vsel %vm400_vm3, %v1192_v10, -inf }
 0x9d9   :  { %v2158_v20 = vpop.f32.mrb[16].mxu0  ;;  %1229 = vmax.xlane.f32.xlu1 %v1228_v19  ;;  %v1225_v24 = vsel %vm400_vm3, %v1187_v18, -inf }
 0x9da   :  { %v1202_v27 = vadd.f32 %v2158_v20, %v1071_v17  ;;  %1226 = vmax.xlane.f32.xlu0 %v1225_v24  ;;  %v1196_v28 = vpop.f32.mrb[17].mxu0 }
 0x9db   :  { %v1197_v30 = vadd.f32 %v1196_v28, %v1069_v35 }
 0x9dc   :  { %v1234_v4 = vsel %vm400_vm3, %v1202_v27, -inf }
 0x9dd   :  { %v2161_v31 = vpop.f32.mrb[18].mxu0  ;;  %v1231_v44 = vsel %vm400_vm3, %v1197_v30, -inf }
 0x9de   :  { %v1206_v34 = vpop.f32.mrb[19].mxu0  ;;  %1235 = vmax.xlane.f32.xlu0 %v1234_v4  ;;  %v1212_v36 = vadd.f32 %v2161_v31, %v1075_v3 }
 0x9df   :  { %v1207_v12 = vadd.f32 %v1206_v34, %v1073_v46 }
 0x9e0   :  { %v1240_v7 = vsel %vm400_vm3, %v1212_v36, -inf }
 0x9e1   :  { %v2164_v6 = vpop.f32.mrb[20].mxu0  ;;  %v1237_v41 = vsel %vm400_vm3, %v1207_v12, -inf }
 0x9e2   :  { %v1216_v13 = vpop.f32.mrb[21].mxu0  ;;  %1238 = vmax.xlane.f32.xlu1 %v1237_v41  ;;  %1232 = vmax.xlane.f32.xlu0 %v1231_v44  ;;  %v1222_v49 = vadd.f32 %v2164_v6, %v1079_v9 }
 0x9e3   :  { %v1217_v47 = vadd.f32 %v1216_v13, %v1077_v43 }
 0x9e4   :  { %v1246_v52 = vsel %vm400_vm3, %v1222_v49, -inf }
 0x9e5   :  { %v1243_v51 = vsel %vm400_vm3, %v1217_v47, -inf }
 0x9e6   :  { %1244 = vmax.xlane.f32.xlu1 %v1243_v51  ;;  %1241 = vmax.xlane.f32.xlu0 %v1240_v7 }
 0x9ea   :  { %1247 = vmax.xlane.f32.xlu0 %v1246_v52 }
 0x9f7   :  { %2478 = vrot.lane.b32.xlu1 %v2467_v57, %s2691_s16 }
 0xa00   :  { %2473 = vrot.lane.b32.xlu0 %v2467_v57, %s2689_s14 }
 0xa04   :  { %2483 = vrot.lane.b32.xlu0 %v2482_v25, %s2692_s1 }
 0xa66   :  { %v1230_v40 = vpop.xlane.xlu1 %1229 }
 0xa67   :  { %v1250_v54 = vsub.f32 %v1192_v10, %v1230_v40  ;;  %v1227_v42 = vpop.xlane.xlu0 %1226 }
 0xa68   :  { %v1249_v48 = vsub.f32 %v1187_v18, %v1227_v42 }
 0xa69   :  { %v1259_v59 = vmul.f32 1.442695, %v1250_v54 }
 0xa6a   :  { %v1257_v60 = vmul.f32 1.442695, %v1249_v48 }
 0xa6b   :  { %2548 = vpow2.f32 %v1259_v59  ;;  %v1236_v61 = vpop.xlane.xlu0 %1235 }
 0xa6c   :  { %2550 = vpow2.f32 %v1257_v60  ;;  %v1252_v62 = vsub.f32 %v1202_v27, %v1236_v61 }
 0xa6e   :  { %v1263_v63 = vmul.f32 1.442695, %v1252_v62 }
 0xa6f   :  { %v1239_v15 = vpop.xlane.xlu1 %1238  ;;  %v1233_v21 = vpop.xlane.xlu0 %1232 }
 0xa70   :  { %2552 = vpow2.f32 %v1263_v63  ;;  %v1253_v22 = vsub.f32 %v1207_v12, %v1239_v15  ;;  %v1251_v26 = vsub.f32 %v1197_v30, %v1233_v21 }
 0xa72   :  { %v1261_v11 = vmul.f32 1.442695, %v1251_v26  ;;  %v1265_v29 = vmul.f32 1.442695, %v1253_v22 }
 0xa73   :  { %v1242_v35 = vpop.xlane.xlu0 %1241  ;;  %v1245_v46 = vpop.xlane.xlu1 %1244 }
 0xa74   :  { %v1254_v43 = vsub.f32 %v1212_v36, %v1242_v35  ;;  %2554 = vpow2.f32 %v1261_v11  ;;  %v1255_v0 = vsub.f32 %v1217_v47, %v1245_v46 }
 0xa75   :  { %v3140_v58 = vpop.eup %2548  ;;  %2556 = vpow2.f32 %v1265_v29 }
 0xa76   :  { %v2551_v5 = vpop.eup %2550  ;;  %v1267_v57 = vmul.f32 1.442695, %v1254_v43  ;;  %v1276_v56 = vsel %vm400_vm3, %v3140_v58, 0.0  ;;  %v1269_v20 = vmul.f32 1.442695, %v1255_v0 }
 0xa77   :  { %1277 = vadd.xlane.f32.xlu0 %v1276_v56  ;;  %v1248_v10 = vpop.xlane.xlu0 %1247  ;;  %v1273_v16 = vsel %vm400_vm3, %v2551_v5, 0.0  ;;  %v2479_v51 = vpop.permute.xlu1 %2478 }
 0xa78   :  { %v1256_v17 = vsub.f32 %v1222_v49, %v1248_v10  ;;  %1274 = vadd.xlane.f32.xlu1 %v1273_v16  ;;  %2558 = vpow2.f32 %v1267_v57  ;;  %v2471_v49 = vunpack.i.h.bf16 %v3135_v32  ;;  %v2480_v25 = vunpack.i.l.bf16 %v2479_v51 }
 0xa79   :  { %v2481_v40 = vunpack.i.h.bf16 %v2479_v51 }
 0xa7a   :  { %v3145_v18 = vpop.eup %2552  ;;  %v1271_v19 = vmul.f32 1.442695, %v1256_v17  ;;  %v2492_v52 = vpack.i.bf16 %v2471_v49, %v3122_v8 }
 0xa7b   :  { %v2474_v24 = vpop.permute.xlu0 %2473  ;;  %v1282_v27 = vsel %vm400_vm3, %v3145_v18, 0.0 }
 0xa7c   :  { %2560 = vpow2.f32 %v1271_v19  ;;  %1283 = vadd.xlane.f32.xlu1 %v1282_v27  ;;  %v2475_v7 = vunpack.i.l.bf16 %v2474_v24  ;;  %v2476_v53 = vunpack.i.h.bf16 %v2474_v24 }
 0xa7d   :  { %2562 = vpow2.f32 %v1269_v20 }
 0xa7e   :  { %v3149_v28 = vpop.eup %2554  ;;  %v2487_v54 = vpack.i.bf16 %v2480_v25, %v2475_v7  ;;  %v2497_v42 = vpack.i.bf16 %v2481_v40, %v2476_v53 }
 0xa7f   :  { %v2484_v3 = vpop.permute.xlu0 %2483  ;;  %v1279_v31 = vsel %vm400_vm3, %v3149_v28, 0.0  ;;  %v3153_v34 = vpop.eup %2556 }
 0xa80   :  { %v2486_v4 = vunpack.i.h.bf16 %v2484_v3  ;;  %v2485_v30 = vunpack.i.l.bf16 %v2484_v3  ;;  %1280 = vadd.xlane.f32.xlu0 %v1279_v31  ;;  %v1285_v6 = vsel %vm400_vm3, %v3153_v34, 0.0 }
 0xa82   :  { %v2330_v12 = vpack.c.bf16 %v2486_v4, %v2485_v30  ;;  %v3155_v36 = vpop.eup %2558 }
 0xa83   :  { %v1288_v41 = vsel %vm400_vm3, %v3155_v36, 0.0 }
 0xa84   :  { %2331 = vmatprep.subr.bf16.mxu1 %v2330_v12  ;;  %1286 = vadd.xlane.f32.xlu0 %v1285_v6 }
 0xa85   :  { %1289 = vadd.xlane.f32.xlu1 %v1288_v41  ;;  %2333 = vmatpush3.bf16.msra.mxu1 %v2330_v12 }
 0xa86   :  { %v3161_v44 = vpop.eup %2560 }
 0xa87   :  { %v1294_v9 = vsel %vm400_vm3, %v3161_v44, 0.0  ;;  %v3165_v13 = vpop.eup %2562 }
 0xa88   :  { %v1291_v47 = vsel %vm400_vm3, %v3165_v13, 0.0 }
 0xa89   :  { %1295 = vadd.xlane.f32.xlu1 %v1294_v9 }
 0xa8d   :  { %1292 = vadd.xlane.f32.xlu1 %v1291_v47 }
 0xa9a   :  { %2493 = vrot.lane.b32.xlu0 %v2492_v52, %s2692_s1 }
 0xa9e   :  { %2488 = vrot.lane.b32.xlu1 %v2487_v54, %s2692_s1  ;;  %2498 = vrot.lane.b32.xlu0 %v2497_v42, %s2692_s1 }
 0xaa2   :  { %2503 = vrot.lane.b32.xlu1 %v3023_v50, %s2688_s13  ;;  %2508 = vrot.lane.b32.xlu0 %v3015_v45, %s2688_s13 }
 0xb04   :  { %v1278_v32 = vpop.xlane.xlu0 %1277 }
 0xb05   :  { %v1275_v48 = vpop.xlane.xlu1 %1274 }
 0xb06   :  { %2564 = vrcp.f32 %v1275_v48 }
 0xb07   :  { %2566 = vrcp.f32 %v1278_v32 }
 0xb09   :  { %v1284_v59 = vpop.xlane.xlu1 %1283 }
 0xb0d   :  { %v1281_v60 = vpop.xlane.xlu0 %1280 }
 0xb0e   :  { %2568 = vrcp.f32 %v1281_v60 }
 0xb0f   :  { %2570 = vrcp.f32 %v1284_v59 }
 0xb10   :  { %v2565_v8 = vpop.eup %2564 }
 0xb11   :  { %v1298_v61 = vmul.f32 %v2565_v8, %v2551_v5  ;;  %v1287_v63 = vpop.xlane.xlu0 %1286  ;;  %v2567_v10 = vpop.eup %2566 }
 0xb12   :  { %v1290_v62 = vpop.xlane.xlu1 %1289  ;;  %2572 = vrcp.f32 %v1287_v63  ;;  %v1300_v17 = vmul.f32 %v2567_v10, %v3140_v58 }
 0xb13   :  { %2181 = vmatprep.mubr.msk.f32.mxu1 %vm400_vm3, %v1298_v61  ;;  %2574 = vrcp.f32 %v1290_v62 }
 0xb15   :  { %v2494_v21 = vpop.permute.xlu0 %2493 }
 0xb16   :  { %v1296_v15 = vpop.xlane.xlu1 %1295  ;;  %v2496_v11 = vunpack.i.h.bf16 %v2494_v21  ;;  %v2495_v29 = vunpack.i.l.bf16 %v2494_v21  ;;  %v1498_v21 = vsub.s32 7, %v2779_v1 }
 0xb18   :  { %v2338_v57 = vpack.c.bf16 %v2496_v11, %v2495_v29  ;;  %v2569_v16 = vpop.eup %2568 }
 0xb19   :  { %v2499_v50 = vpop.permute.xlu0 %2498  ;;  %v2571_v19 = vpop.eup %2570  ;;  %v1302_v20 = vmul.f32 %v2569_v16, %v3149_v28 }
 0xb1a   :  { %v1293_v22 = vpop.xlane.xlu1 %1292  ;;  %v2501_v56 = vunpack.i.h.bf16 %v2499_v50  ;;  %v2500_v0 = vunpack.i.l.bf16 %v2499_v50  ;;  %v1304_v27 = vmul.f32 %v2571_v19, %v3145_v18 }
 0xb1b   :  { %2576 = vrcp.f32 %v1293_v22  ;;  %v2588_v22 = vld [vmem:[#allocation7] sm:$0xff] }
 0xb1c   :  { %v2342_v5 = vpack.c.bf16 %v2501_v56, %v2500_v0  ;;  %2578 = vrcp.f32 %v1296_v15  ;;  %v2573_v24 = vpop.eup %2572 }
 0xb1d   :  { %v2575_v3 = vpop.eup %2574  ;;  %v1306_v4 = vmul.f32 %v2573_v24, %v3153_v34 }
 0xb1e   :  { %v2489_v26 = vpop.permute.xlu1 %2488  ;;  %v1308_v58 = vmul.f32 %v2575_v3, %v3155_v36  ;;  %v2509_v36 = vpop.permute.xlu0 %2508  ;;  %v71_v3 = vld [vmem:[%s3297_s2 + $0x28] sm:$0xff] }
 0xb1f   :  { %v2491_v35 = vunpack.i.h.bf16 %v2489_v26  ;;  %v2490_v46 = vunpack.i.l.bf16 %v2489_v26  ;;  %v2511_v9 = vunpack.i.h.bf16 %v2509_v36  ;;  %v1499_v26 = vrot.slane %v2588_v22, %v1498_v21 }
 0xb21   :  { %v2334_v43 = vpack.c.bf16 %v2491_v35, %v2490_v46 }
 0xb22   :  { %v2504_v18 = vpop.permute.xlu1 %2503 }
 0xb23   :  { %2335 = vmatprep.subr.bf16.mxu1 %v2334_v43  ;;  %v2506_v34 = vunpack.i.h.bf16 %v2504_v18  ;;  %v2505_v6 = vunpack.i.l.bf16 %v2504_v18  ;;  %v80_v18 = vld [vmem:[%s3298_s3 + $0x10] sm:$0xff] }
 0xb24   :  { %2337 = vmatpush3.bf16.msra.mxu1 %v2334_v43 }
 0xb25   :  { %2339 = vmatprep.subr.bf16.mxu1 %v2338_v57  ;;  %v2577_v30 = vpop.eup %2576  ;;  %v2346_v41 = vpack.c.bf16 %v2506_v34, %v2505_v6  ;;  %v81_v6 = vld [vmem:[%s3298_s3 + $0x18] sm:$0xff] }
 0xb26   :  { %v2579_v31 = vpop.eup %2578  ;;  %v1310_v28 = vmul.f32 %v2577_v30, %v3165_v13  ;;  %v2510_v13 = vunpack.i.l.bf16 %v2509_v36  ;;  %v74_v30 = vld [vmem:[%s3297_s2 + $0x40] sm:$0xff] }
 0xb27   :  { %v1312_v12 = vmul.f32 %v2579_v31, %v3161_v44  ;;  %v82_v36 = vld [vmem:[%s3298_s3 + $0x20] sm:$0xff] }
 0xb28   :  { %2341 = vmatpush3.bf16.msra.mxu1 %v2338_v57  ;;  %v2350_v47 = vpack.c.bf16 %v2511_v9, %v2510_v13  ;;  %v83_v9 = vld [vmem:[%s3298_s3 + $0x28] sm:$0xff] }
 0xb29   :  { %2343 = vmatprep.subr.bf16.mxu1 %v2342_v5  ;;  %v2370_v13 = vpack.c.bf16 %v83_v9, %v82_v36 }
 0xb2c   :  { %2345 = vmatpush3.bf16.msra.mxu1 %v2342_v5 }
 0xb2d   :  { %2347 = vmatprep.subr.bf16.mxu1 %v2346_v41 }
 0xb2f   :  { %2182 = vmatmul.mubr.msk.f32.vlgmr.msra.gmra.mrb[10].mxu1 %vm400_vm3, %v1300_v17 }
 0xb30   :  { %2184 = vmatprep.mubr.msk.f32.mxu1 %vm400_vm3, %v1302_v20  ;;  %2349 = vmatpush3.bf16.msra.mxu1 %v2346_v41  ;;  %v2366_v41 = vpack.c.bf16 %v81_v6, %v80_v18 }
 0xb31   :  { %2351 = vmatprep.subr.bf16.mxu1 %v2350_v47 }
 0xb33   :  { %2185 = vmatmul.mubr.msk.f32.gmra.mrb[12].mxu1 %vm400_vm3, %v1304_v27  ;;  %v68_v27 = vld [vmem:[%s3297_s2 + $0x10] sm:$0xff] }
 0xb34   :  { %2187 = vmatprep.mubr.msk.f32.mxu1 %vm400_vm3, %v1306_v4  ;;  %2353 = vmatpush3.bf16.msra.mxu1 %v2350_v47  ;;  %v2354_v4 = vpack.c.bf16 %v71_v3, %v68_v27 }
 0xb36   :  { %2355 = vmatprep.subr.bf16.mxu1 %v2354_v4 }
 0xb37   :  { %2188 = vmatmul.mubr.msk.f32.gmra.mrb[14].mxu1 %vm400_vm3, %v1308_v58  ;;  %v77_v58 = vld [vmem:[%s3297_s2 + $0x58] sm:$0xff] }
 0xb38   :  { %2190 = vmatprep.mubr.msk.f32.mxu1 %vm400_vm3, %v1310_v28  ;;  %v2358_v31 = vpack.c.bf16 %v77_v58, %v74_v30  ;;  %v78_v28 = vld [vmem:[%s3298_s3] sm:$0xff] }
 0xb3b   :  { %2191 = vmatmul.mubr.msk.f32.gmra.mrb[16].mxu1 %vm400_vm3, %v1312_v12  ;;  %v79_v12 = vld [vmem:[%s3298_s3 + $0x8] sm:$0xff] }
 0xb3c   :  { %v2362_v34 = vpack.c.bf16 %v79_v12, %v78_v28  ;;  %v1828_v28 = vrot.slane %v3033_v23, %v1006_v38  ;;  %v1840_v12 = vrot.slane %v3033_v23, %v1498_v21 }
 0xb3e   :  { %2363 = vmatprep.subr.bf16.mxu0 %v2362_v34 }
 0xb3f   :  { %2365 = vmatpush3.bf16.msra.mxu0 %v2362_v34 }
 0xb40   :  { %2367 = vmatprep.subr.bf16.mxu0 %v2366_v41 }
 0xb43   :  { %2369 = vmatpush3.bf16.msra.mxu0 %v2366_v41 }
 0xb44   :  { %2371 = vmatprep.subr.bf16.mxu0 %v2370_v13 }
 0xb47   :  { %2373 = vmatpush3.bf16.msra.mxu0 %v2370_v13 }
 0xc02   :  { %v2183_v49 = vpop.f32.mrb[10].mxu1 }
 0xc03   :  { %1467 = vrot.lane.b32.xlu1 %v2183_v49, %s2686_s6  ;;  %v1427_v44 = vpop.f32.mrb[11].mxu1 }
 0xc06   :  { %v2186_v51 = vpop.f32.mrb[12].mxu1 }
 0xc07   :  { %1475 = vrot.lane.b32.xlu0 %v2186_v51, %s2694_s18  ;;  %v1437_v45 = vpop.f32.mrb[13].mxu1 }
 0xc0a   :  { %v2189_v7 = vpop.f32.mrb[14].mxu1 }
 0xc0b   :  { %1471 = vrot.lane.b32.xlu0 %v1437_v45, %s2695_s19  ;;  %1482 = vrot.lane.b32.xlu1 %v2189_v7, %s2686_s6  ;;  %v1447_v52 = vpop.f32.mrb[15].mxu1 }
 0xc0e   :  { %v2192_v53 = vpop.f32.mrb[16].mxu1 }
 0xc0f   :  { %1490 = vrot.lane.b32.xlu0 %v2192_v53, %s2694_s18  ;;  %v1457_v25 = vpop.f32.mrb[17].mxu1  ;;  %v1628_v53 = vrot.slane %v3033_v23, %v1000_v33  ;;  %v84_v33 = vld [vmem:[%s3298_s3 + $0x30] sm:$0xff] }
 0xc10   :  { %1486 = vrot.lane.b32.xlu1 %v1457_v25, %s2695_s19 }
 0xc75   :  { %v1468_v40 = vpop.permute.xlu1 %1467 }
 0xc76   :  { %v1478_v42 = vsel %vm262_vm1, %v1427_v44, %v1468_v40 }
 0xc79   :  { %v1476_v54 = vpop.permute.xlu0 %1475 }
 0xc7d   :  { %v1472_v48 = vpop.permute.xlu0 %1471  ;;  %v1483_v32 = vpop.permute.xlu1 %1482 }
 0xc7e   :  { %v1479_v59 = vsel %vm655_vm4, %v1478_v42, %v1472_v48  ;;  %v1493_v8 = vsel %vm262_vm1, %v1447_v52, %v1483_v32  ;;  %v1616_v52 = vrot.slane %v3033_v23, %v818_v55  ;;  %v85_v55 = vld [vmem:[%s3298_s3 + $0x38] sm:$0xff]  ;;  %s2696_s3 = smov [#allocation8]  }
 0xc7f   :  { %v1480_v60 = vsel %vm657_vm5, %v1479_v59, %v1476_v54  ;;  %s1852_s26 = sshll.u32 %s2696_s3, 4  ;;  %s1853_s26 = int_to_ptr.vmem [resolvable:$true] %s1852_s26 }
 0xc80   :  { %2201 = vmatprep.mubr.msk.f32.mxu1 %vm96_vm0, %v1480_v60  ;;  %s2655_s27 = scalar_lea.vmem %s1853_s26, 256  ;;  %p2660_p11 = scmp.lt.s32.totalorder %s1853_s26, %s1853_s26 }
 0xc81   :  { %v1491_v62 = vpop.permute.xlu0 %1490  ;;  %p2656_p10 = scmp.ne.s32.totalorder %s1853_s26, %s2655_s27  ;;  %p2661_p12 = scmp.lt.s32.totalorder %s2655_s27, %s2655_s27 }
 0xc82   :  { %v1487_v61 = vpop.permute.xlu1 %1486 }
 0xc83   :  { %v1494_v63 = vsel %vm655_vm4, %v1493_v8, %v1487_v61  ;;  %p2662_p13 = por %p2661_p12, %p2660_p11 }
 0xc84   :  { %v1495_v15 = vsel %vm657_vm5, %v1494_v63, %v1491_v62  ;;  %v2374_v62 = vpack.c.bf16 %v85_v55, %v84_v33 }
 0xc85   :  { %2202 = vmatmul.mubr.msk.f32.vlgmr.msra.gmra.mrb[18].mxu1 %vm96_vm0, %v1495_v15  ;;  %p2663_p0 = pnand %p2662_p13, %p2656_p10 }
 0xc86   :  { %2357 = vmatpush3.bf16.msra.mxu1 %v2354_v4  ;;  %2375 = vmatprep.subr.bf16.mxu0 %v2374_v62 }
 0xc87   :  { %2359 = vmatprep.subr.bf16.mxu1 %v2358_v31  ;;  %2377 = vmatpush3.bf16.msra.mxu0 %v2374_v62 }
 0xc8a   :  { %2361 = vmatpush3.bf16.msra.mxu1 %v2358_v31 }
 0xd58   :  { %v2203_v11 = vpop.f32.mrb[18].mxu1 }
 0xd59   :  { %v1590_v29 = vadd.f32 %v2203_v11, %v1499_v26  ;;  %v1584_v35 = vpop.f32.mrb[19].mxu1 }
 0xd5a   :  { %v1585_v46 = vadd.f32 %v1584_v35, %v1499_v26 }
 0xd5b   :  { %v1596_v50 = vsel %vm96_vm0, %v1590_v29, 0.0 }
 0xd5c   :  { %1597 = vadd.xlane.f32.xlu0 %v1596_v50  ;;  %v1593_v43 = vsel %vm96_vm0, %v1585_v46, 0.0 }
 0xd5d   :  { %1594 = vadd.xlane.f32.xlu1 %v1593_v43 }
 0xde9   :  { %v1598_v57 = vpop.xlane.xlu0 %1597 }
 0xdea   :  { %v1600_v56 = vmul.f32 0.03125, %v1598_v57  ;;  %v1595_v0 = vpop.xlane.xlu1 %1594 }
 0xdeb   :  { %v1599_v5 = vmul.f32 0.03125, %v1595_v0 }
 0xdec   :  { %v1602_v10 = vsub.f32 %v1590_v29, %v1600_v56  ;;  %v1723_v29 = vrot.slane %v3033_v23, %v186_v2 }
 0xded   :  { %v1601_v16 = vsub.f32 %v1585_v46, %v1599_v5 }
 0xdee   :  { %v1604_v17 = vmul.f32 %v1602_v10, %v1602_v10  ;;  %v1618_v25 = vmul.f32 %v1616_v52, %v1602_v10 }
 0xdef   :  { %v1603_v19 = vmul.f32 %v1601_v16, %v1601_v16  ;;  %v1617_v54 = vmul.f32 %v1616_v52, %v1601_v16 }
 0xdf0   :  { %v1608_v20 = vsel %vm96_vm0, %v1604_v17, 0.0 }
 0xdf1   :  { %1609 = vadd.xlane.f32.xlu1 %v1608_v20  ;;  %v1605_v24 = vsel %vm96_vm0, %v1603_v19, 0.0 }
 0xdf2   :  { %1606 = vadd.xlane.f32.xlu0 %v1605_v24 }
 0xe7e   :  { %v1610_v47 = vpop.xlane.xlu1 %1609 }
 0xe7f   :  { %v1612_v49 = vmul.f32 0.03125, %v1610_v47  ;;  %v1607_v44 = vpop.xlane.xlu0 %1606 }
 0xe80   :  { %v1611_v51 = vmul.f32 0.03125, %v1607_v44 }
 0xe81   :  { %v1620_v45 = vadd.f32 1e-06, %v1612_v49 }
 0xe82   :  { %v1619_v7 = vadd.f32 1e-06, %v1611_v51 }
 0xe83   :  { %2580 = vrsqrt.f32 %v1620_v45 }
 0xe84   :  { %2582 = vrsqrt.f32 %v1619_v7 }
 0xe8d   :  { %v2581_v40 = vpop.eup %2580 }
 0xe8e   :  { %v2583_v42 = vpop.eup %2582  ;;  %v1624_v48 = vmul.f32 %v2581_v40, %v1618_v25 }
 0xe8f   :  { %v1623_v32 = vmul.f32 %v2583_v42, %v1617_v54 }
 0xe90   :  { %v1630_v59 = vadd.f32 %v1628_v53, %v1624_v48 }
 0xe91   :  { %v1629_v60 = vadd.f32 %v1628_v53, %v1623_v32 }
 0xe92   :  { %v1632_v61 = vadd.f32 %v1630_v59, %v3043_v39 }
 0xe93   :  { %v1631_v8 = vadd.f32 %v1629_v60, %v3040_v37  ;;  %v1636_v37 = vrot.slane %v3033_v23, %v180_v14 }
 0xe95   :  { %2212 = vmatprep.mubr.msk.f32.mxu1 %vm96_vm0, %v1631_v8 }
 0xe96   :  { %2213 = vmatmul.mubr.msk.f32.vlgmr.msra.gmra.mrb[20].mxu1 %vm96_vm0, %v1632_v61 }
 0xf69   :  { %v2214_v39 = vpop.f32.mrb[20].mxu1 }
 0xf6a   :  { %v1715_v63 = vadd.f32 %v2214_v39, %v1636_v37  ;;  %v1709_v15 = vpop.f32.mrb[21].mxu1 }
 0xf6b   :  { %v1710_v22 = vadd.f32 %v1709_v15, %v1636_v37 }
 0xf6c   :  { %v1719_v11 = vmax.f32 %v1715_v63, 0.0 }
 0xf6d   :  { %v1718_v26 = vmax.f32 %v1710_v22, 0.0 }
 0xf6f   :  { %2231 = vmatprep.mubr.msk.f32.mxu0 %vm400_vm3, %v1718_v26 }
 0xf70   :  { %2232 = vmatmul.mubr.msk.f32.vlgmr.msra.gmra.mrb[22].mxu0 %vm400_vm3, %v1719_v11 }
0x1043   :  { %v2233_v35 = vpop.f32.mrb[22].mxu0 }
0x1044   :  { %v1802_v46 = vadd.f32 %v2233_v35, %v1723_v29  ;;  %v1796_v50 = vpop.f32.mrb[23].mxu0 }
0x1045   :  { %v1797_v43 = vadd.f32 %v1796_v50, %v1723_v29 }
0x1046   :  { %v1808_v14 = vsel %vm96_vm0, %v1802_v46, 0.0 }
0x1047   :  { %1809 = vadd.xlane.f32.xlu1 %v1808_v14  ;;  %v1805_v57 = vsel %vm96_vm0, %v1797_v43, 0.0 }
0x1048   :  { %1806 = vadd.xlane.f32.xlu0 %v1805_v57 }
0x10d4   :  { %v1810_v56 = vpop.xlane.xlu1 %1809 }
0x10d5   :  { %v1812_v0 = vmul.f32 0.03125, %v1810_v56  ;;  %v1807_v5 = vpop.xlane.xlu0 %1806 }
0x10d6   :  { %v1811_v10 = vmul.f32 0.03125, %v1807_v5 }
0x10d7   :  { %v1814_v16 = vsub.f32 %v1802_v46, %v1812_v0 }
0x10d8   :  { %v1813_v17 = vsub.f32 %v1797_v43, %v1811_v10 }
0x10d9   :  { %v1816_v19 = vmul.f32 %v1814_v16, %v1814_v16  ;;  %v1830_v18 = vmul.f32 %v1828_v28, %v1814_v16 }
0x10da   :  { %v1815_v20 = vmul.f32 %v1813_v17, %v1813_v17  ;;  %v1829_v6 = vmul.f32 %v1828_v28, %v1813_v17 }
0x10db   :  { %v1820_v2 = vsel %vm96_vm0, %v1816_v19, 0.0 }
0x10dc   :  { %1821 = vadd.xlane.f32.xlu1 %v1820_v2  ;;  %v1817_v24 = vsel %vm96_vm0, %v1815_v20, 0.0 }
0x10dd   :  { %1818 = vadd.xlane.f32.xlu0 %v1817_v24 }
0x1169   :  { %v1822_v27 = vpop.xlane.xlu1 %1821 }
0x116a   :  { %v1824_v3 = vmul.f32 0.03125, %v1822_v27  ;;  %v1819_v4 = vpop.xlane.xlu0 %1818 }
0x116b   :  { %v1823_v30 = vmul.f32 0.03125, %v1819_v4 }
0x116c   :  { %v1832_v58 = vadd.f32 1e-06, %v1824_v3 }
0x116d   :  { %v1831_v31 = vadd.f32 1e-06, %v1823_v30 }
0x116e   :  { %2584 = vrsqrt.f32 %v1832_v58 }
0x116f   :  { %2586 = vrsqrt.f32 %v1831_v31 }
0x1178   :  { %v2585_v34 = vpop.eup %2584 }
0x1179   :  { %v2587_v41 = vpop.eup %2586  ;;  %v1836_v36 = vmul.f32 %v2585_v34, %v1830_v18 }
0x117a   :  { %v1835_v9 = vmul.f32 %v2587_v41, %v1829_v6 }
0x117b   :  { %v1842_v13 = vadd.f32 %v1840_v12, %v1836_v36 }
0x117c   :  { %v1841_v47 = vadd.f32 %v1840_v12, %v1835_v9 }
0x117d   :  { %v1844_v49 = vadd.f32 %v1842_v13, %v1632_v61 }
0x117e   :  { %v1843_v44 = vadd.f32 %v1841_v47, %v1631_v8 }
0x117f   :  { %1846 = vst.msk [vmem:[#allocation8 + $0x8] sm:$0xff] %vm96_vm0, %v1844_v49 }
0x1180   :  { %1845 = vst.msk [vmem:[#allocation8] sm:$0xff] %vm96_vm0, %v1843_v44 }
0x1181   :  { %2666 = shalt.err (!%p2663_p0)
}
0x1182   :  { %s2667_s21 = scalar_lea.hbm %s3300_s5, 256 }
0x1183   :  { %p2668_p1 = scmp.ne.s32.totalorder %s3300_s5, %s2667_s21  ;;  %p2671_p2 = scmp.lt.u32.totalorder %s2667_s21, %s3300_s5 }
0x1185   :  { %p2673_p3 = pnand %p2671_p2, %p2668_p1 }
0x1187   :  { %2676 = shalt.err (!%p2673_p3)
}
0x1188   :  { %1858 = dma.vmem_to_hbm [thread:$0]  %s1853_s26, 256, %s3300_s5, [#allocation4], %s2685_s30, %s2685_s30, %s2686_s6  }
0x1189   :  { %2681 = dma.done.wait [#allocation4], 256  }
0x118a   :  { %2682 = vsyncadd [#allocation4], 4294967040 }
0x118b   :  { %1862 = vsyncpa [#allocation3], 1 }
0x118c   :  { %1863 = vsyncpa [#allocation6], 1 }
0x118d   :  { %1864 = vsyncpa [#allocation4], 1 }

</bundles_post_ra>
